<compile_context>
chip_gen: v7x
topology: tpu7x:2x2x1
jax: 0.10.0
libtpu: 0.0.40
codegen_flags: <defaults>
</compile_context>

<pallas_src>
import math

import jax
import jax.numpy as jnp
from jax.experimental import pallas as pl
from jax.experimental.pallas import tpu as pltpu
from jax.scipy.linalg import block_diag

_SQRT_2_OVER_PI = 0.7978845608028654


def _gelu_tanh(x):
    # tanh-approximate GELU; lowers cleanly to the EUP (f32 element-wise math).
    return 0.5 * x * (1.0 + jnp.tanh(_SQRT_2_OVER_PI * (x + 0.044715 * x * x * x)))


def _round_up(v, m):
    return -(-v // m) * m


def _vmem_capacity_bytes():
    try:
        return int(pltpu.get_tpu_info().vmem_capacity_bytes)
    except Exception:
        return 64 * 1024 * 1024  # conservative fallback (v7x per-core VMEM)


# ----------------------------------------------------------------------------
# Kernels
# ----------------------------------------------------------------------------
def _ffn_kernel(x_ref, w1_ref, b1_ref, w2_ref, b2_ref, o_ref):
    # Fully fused: both matmuls, bias adds and GELU on one VMEM-resident tile.
    h = jnp.dot(x_ref[...], w1_ref[...], preferred_element_type=jnp.float32)
    h = _gelu_tanh(h + b1_ref[...])          # f32 element-wise (v5e-safe)
    h = h.astype(w2_ref.dtype)               # bf16 feed to MXU when enabled
    y = jnp.dot(h, w2_ref[...], preferred_element_type=jnp.float32)
    o_ref[...] = (y + b2_ref[...]).astype(o_ref.dtype)


def _ffn_hidden_tiled_kernel(x_ref, w1_ref, b1_ref, w2_ref, b2_ref, o_ref, acc_ref):
    # Fallback for weights that do not fit VMEM: tile the hidden dimension and
    # accumulate the second matmul in an f32 scratch accumulator.
    k = pl.program_id(1)

    @pl.when(k == 0)
    def _():
        acc_ref[...] = jnp.zeros_like(acc_ref)

    h = jnp.dot(x_ref[...], w1_ref[...], preferred_element_type=jnp.float32)
    h = _gelu_tanh(h + b1_ref[...])
    h = h.astype(w2_ref.dtype)
    acc_ref[...] += jnp.dot(h, w2_ref[...], preferred_element_type=jnp.float32)

    @pl.when(k == pl.num_programs(1) - 1)
    def _():
        o_ref[...] = (acc_ref[...] + b2_ref[...]).astype(o_ref.dtype)


# ----------------------------------------------------------------------------
# Tile sizing
# ----------------------------------------------------------------------------
def _auto_tm(n, c_in, c_out, in_bytes, out_bytes, vmem_budget, fixed_bytes,
             extra_per_row):
    per_row = 2 * c_in * in_bytes + 2 * c_out * out_bytes + extra_per_row
    tm = (vmem_budget - fixed_bytes) // max(per_row, 1)
    # Roofline knee: ~1 MiB of x+y HBM traffic per grid step is enough to hide
    # the ~0.35 us per-step overhead on v5e/v6e/v7x; bigger tiles only burn VMEM.
    knee = (1 << 20) // max(c_in * in_bytes + c_out * out_bytes, 1)
    tm = min(tm, max(knee, 512))
    tm = max(tm, 256)
    # Guarantee >=2 (up to 8) grid steps when there are enough rows, so v7x's
    # two TensorCores ("parallel" axis) and DMA/compute overlap get used.
    if n >= 512:
        steps = min(8, max(2, n // 256))
        tm = min(tm, -(-n // steps))
    return int(tm)


def _align_tm(tm, n, in_bytes):
    if tm >= n:
        return n                      # single full block (always layout-legal)
    align = 16 if in_bytes < 4 else 8  # bf16 packs 2 rows/sublane -> 16-align
    return max(align, (tm // align) * align)


# ----------------------------------------------------------------------------
# pallas_call wrappers
# ----------------------------------------------------------------------------
def _run_resident(x2, w1, b1m, w2, b2m, tm, out_dtype, vmem_limit):
    n, ci = x2.shape
    ch = w1.shape[1]
    co = w2.shape[1]
    grid = (pl.cdiv(n, tm),)

    def build(single_buffer_weights):
        if single_buffer_weights:
            def const_spec(shape):
                return pl.BlockSpec(shape, lambda i: (0, 0),
                                    pipeline_mode=pl.Buffered(1))
        else:
            def const_spec(shape):
                return pl.BlockSpec(shape, lambda i: (0, 0))
        return pl.pallas_call(
            _ffn_kernel,
            out_shape=jax.ShapeDtypeStruct((n, co), out_dtype),
            grid_spec=pltpu.PrefetchScalarGridSpec(
                num_scalar_prefetch=0,
                grid=grid,
                in_specs=[
                    pl.BlockSpec((tm, ci), lambda i: (i, 0)),
                    const_spec((ci, ch)),   # grid-invariant -> single buffer
                    const_spec((1, ch)),
                    const_spec((ch, co)),
                    const_spec((1, co)),
                ],
                out_specs=pl.BlockSpec((tm, co), lambda i: (i, 0)),
            ),
            compiler_params=pltpu.CompilerParams(
                dimension_semantics=("parallel",),
                vmem_limit_bytes=vmem_limit,
            ),
        )

    args = (x2, w1, b1m, w2, b2m)
    if hasattr(pl, "Buffered"):
        try:
            return build(True)(*args)
        except Exception:
            pass  # Buffered(1) unsupported on this JAX build -> default buffering
    return build(False)(*args)


def _run_hidden_tiled(x2, w1, b1m, w2, b2m, tm, tk, out_dtype, vmem_limit):
    n, ci = x2.shape
    ch = w1.shape[1]
    co = w2.shape[1]
    # Pad c_hid to a multiple of tk with zeros: gelu(0+0)=0 so padded hidden
    # columns contribute exactly nothing to the accumulated output.
    hp = _round_up(ch, tk)
    if hp != ch:
        w1 = jnp.pad(w1, ((0, 0), (0, hp - ch)))
        b1m = jnp.pad(b1m, ((0, 0), (0, hp - ch)))
        w2 = jnp.pad(w2, ((0, hp - ch), (0, 0)))
    grid = (pl.cdiv(n, tm), hp // tk)
    return pl.pallas_call(
        _ffn_hidden_tiled_kernel,
        out_shape=jax.ShapeDtypeStruct((n, co), out_dtype),
        grid_spec=pltpu.PrefetchScalarGridSpec(
            num_scalar_prefetch=0,
            grid=grid,
            in_specs=[
                pl.BlockSpec((tm, ci), lambda i, k: (i, 0)),
                pl.BlockSpec((ci, tk), lambda i, k: (0, k)),
                pl.BlockSpec((1, tk), lambda i, k: (0, k)),
                pl.BlockSpec((tk, co), lambda i, k: (k, 0)),
                pl.BlockSpec((1, co), lambda i, k: (0, 0)),
            ],
            out_specs=pl.BlockSpec((tm, co), lambda i, k: (i, 0)),
            scratch_shapes=[pltpu.VMEM((tm, co), jnp.float32)],
        ),
        compiler_params=pltpu.CompilerParams(
            dimension_semantics=("parallel", "arbitrary"),
            vmem_limit_bytes=vmem_limit,
        ),
    )(x2, w1, b1m, w2, b2m)


# ----------------------------------------------------------------------------
# Public entry point
# ----------------------------------------------------------------------------
def feed_forward(x, w1, b1, w2, b2, *, tm=None, hidden_block=None, use_bf16=True):
    """y = GELU(x @ w1 + b1) @ w2 + b2   (dropout omitted: p=0 / eval mode).

    x: (..., c_in).  w1: (c_in, c_hid), w2: (c_hid, c_out) -- already the
    transposed nn.Linear weights.  b1: (c_hid,), b2: (c_out,).
    tm: rows per grid step of the (possibly lane-folded) row matrix.
    hidden_block: force the hidden-dim-tiled path with this c_hid chunk size.
    """
    orig_shape = x.shape
    c_in = orig_shape[-1]
    c_hid = w1.shape[-1]
    c_out = w2.shape[-1]
    n = int(math.prod(orig_shape[:-1]))
    out_dtype = x.dtype

    x2 = x.reshape(n, c_in)
    b1v = b1.reshape(-1)
    b2v = b2.reshape(-1)

    # Lane-density folding for small channel counts: fold G consecutive rows
    # into the lane dimension with block-diagonal weights (trace-time, tiny),
    # so x loads, the hidden tile and y stores are all lane-dense.
    fold = 1
    if hidden_block is None and c_in < 128 and c_out < 128:
        g = 128 // max(c_in, c_out)
        if g > 1 and n % g == 0 and c_hid * g <= 2048:
            fold = g
    if fold > 1:
        x2 = x2.reshape(n // fold, fold * c_in)
        w1 = block_diag(*([w1] * fold))
        w2 = block_diag(*([w2] * fold))
        b1v = jnp.tile(b1v, fold)
        b2v = jnp.tile(b2v, fold)

    if use_bf16:
        # Halves HBM traffic for x / W1 / W2 and keeps the MXU on its fast
        # bf16 path; accumulation and element-wise math stay f32.
        x2 = x2.astype(jnp.bfloat16)
        w1 = w1.astype(jnp.bfloat16)
        w2 = w2.astype(jnp.bfloat16)

    n_r, ci = x2.shape
    ch = w1.shape[1]
    co = w2.shape[1]
    b1m = b1v.reshape(1, ch).astype(jnp.float32)
    b2m = b2v.reshape(1, co).astype(jnp.float32)

    in_bytes = jnp.dtype(x2.dtype).itemsize
    w_bytes = jnp.dtype(w1.dtype).itemsize
    out_bytes = jnp.dtype(out_dtype).itemsize

    vmem_cap = _vmem_capacity_bytes()
    vmem_limit = int(vmem_cap * 0.70)   # well above v5e's 16 MiB scoped default
    vmem_budget = int(vmem_cap * 0.55)  # tile-sizing budget, consistent w/ limit

    # Weights + biases, single-buffered (grid-invariant) in the resident path.
    weight_bytes = (ci * ch + ch * co) * w_bytes + (ch + co) * 4
    use_tiled = hidden_block is not None or weight_bytes > int(0.40 * vmem_cap)

    if not use_tiled:
        if tm is None:
            # extra per row: f32 hidden + bf16 hidden cast + f32 y temporaries
            tm = _auto_tm(n_r, ci, co, in_bytes, out_bytes, vmem_budget,
                          weight_bytes, 6 * ch + 4 * co)
        tm = _align_tm(int(tm), n_r, in_bytes)
        out2 = _run_resident(x2, w1, b1m, w2, b2m, tm, out_dtype, vmem_limit)
    else:
        if hidden_block is not None:
            tk = max(128, (int(hidden_block) // 128) * 128)
        else:
            # double-buffered (ci,tk)+(tk,co) weight slices <= ~half the budget
            tk = (vmem_budget // 2) // max(2 * (ci + co) * w_bytes, 1)
            tk = max(128, min(4096, (tk // 128) * 128))
        tk = min(tk, _round_up(ch, 128))
        fixed = 2 * (ci + co) * tk * w_bytes + 2 * (tk + co) * 4
        if tm is None:
            tm = _auto_tm(n_r, ci, co, in_bytes, out_bytes, vmem_budget,
                          fixed, 6 * tk + 8 * co)
        tm = _align_tm(int(tm), n_r, in_bytes)
        out2 = _run_hidden_tiled(x2, w1, b1m, w2, b2m, tm, tk, out_dtype,
                                 vmem_limit)

    if fold > 1:
        out2 = out2.reshape(n, c_out)
    return out2.reshape(orig_shape[:-1] + (c_out,))


def feed_forward_ref(x, w1, b1, w2, b2):
    """Pure-JAX reference matching the kernel (tanh-approx GELU)."""
    h = jnp.einsum("...i,ih->...h", x, w1) + b1
    h = _gelu_tanh(h)
    return jnp.einsum("...h,ho->...o", h, w2) + b2


if __name__ == "__main__":
    key = jax.random.PRNGKey(0)
    kx, kw1, kb1, kw2, kb2 = jax.random.split(key, 5)

    # small shapes: batch=2, seq=200, in_channels=32, hidden=64, out=32
    batch, seq, c_in, c_hid = 2, 200, 32, 64
    c_out = c_in
    x = jax.random.normal(kx, (batch, seq, c_in), dtype=jnp.float32)
    w1 = jax.random.normal(kw1, (c_in, c_hid), dtype=jnp.float32) * 0.05
    b1 = 0.1 * jax.random.normal(kb1, (c_hid,), dtype=jnp.float32)
    w2 = jax.random.normal(kw2, (c_hid, c_out), dtype=jnp.float32) * 0.05
    b2 = 0.1 * jax.random.normal(kb2, (c_out,), dtype=jnp.float32)

    ref = feed_forward_ref(x, w1, b1, w2, b2)

    # 1) default path: bf16 traffic + lane folding (G=4 -> 128-wide) + auto tile
    out = jax.block_until_ready(feed_forward(x, w1, b1, w2, b2))
    assert out.shape == (batch, seq, c_out), out.shape
    err = float(jnp.max(jnp.abs(out - ref)))
    assert err < 5e-2, err

    # 2) f32 path (no quantization), tight tolerance
    out32 = jax.block_until_ready(feed_forward(x, w1, b1, w2, b2, use_bf16=False))
    err32 = float(jnp.max(jnp.abs(out32 - ref)))
    assert err32 < 1e-4, err32

    # 3) forced multi-step grid with a ragged last row tile (folded n=100, tm=48)
    out3 = jax.block_until_ready(feed_forward(x, w1, b1, w2, b2, tm=48))
    err3 = float(jnp.max(jnp.abs(out3 - ref)))
    assert err3 < 5e-2, err3

    # 4) hidden-dim-tiled fallback path (forced): c_in=c_out=128, c_hid=512
    c_in2, c_hid2, c_out2, n2 = 128, 512, 128, 256
    k2 = jax.random.split(key, 4)
    x_b = jax.random.normal(k2[0], (n2, c_in2), dtype=jnp.float32)
    w1b = jax.random.normal(k2[1], (c_in2, c_hid2), dtype=jnp.float32) * 0.03
    b1b = 0.1 * jax.random.normal(k2[2], (c_hid2,), dtype=jnp.float32)
    w2b = jax.random.normal(k2[3], (c_hid2, c_out2), dtype=jnp.float32) * 0.03
    b2b = jnp.zeros((c_out2,), dtype=jnp.float32)
    ref_b = feed_forward_ref(x_b, w1b, b1b, w2b, b2b)
    out4 = jax.block_until_ready(
        feed_forward(x_b, w1b, b1b, w2b, b2b, use_bf16=False, hidden_block=128))
    err4 = float(jnp.max(jnp.abs(out4 - ref_b)))
    assert err4 < 1e-3, err4

    print("KERNEL_OK")
</pallas_src>

<mosaic_0001>
module attributes {stable_mosaic.version = 11 : i64} {
  func.func @_ffn_kernel(%arg0: i32, %arg1: memref<100x128xbf16, #tpu.memory_space<vmem>>, %arg2: memref<128x256xbf16, #tpu.memory_space<vmem>>, %arg3: memref<1x256xf32, #tpu.memory_space<vmem>>, %arg4: memref<256x128xbf16, #tpu.memory_space<vmem>>, %arg5: memref<1x128xf32, #tpu.memory_space<vmem>>, %arg6: memref<100x128xf32, #tpu.memory_space<vmem>>) attributes {dimension_semantics = [#tpu.dimension_semantics<parallel>], iteration_bounds = array<i64: 1>, scalar_prefetch = 0 : i64, scratch_operands = 0 : i64, tpu.core_type = #tpu.core_type<tc>, window_params = [{transform_indices = @transform_0, window_bounds = array<i64: 100, 128>}, {pipeline_mode = #tpu.pipeline_mode<synchronous>, transform_indices = @transform_1, window_bounds = array<i64: 128, 256>}, {pipeline_mode = #tpu.pipeline_mode<synchronous>, transform_indices = @transform_2, window_bounds = array<i64: 1, 256>}, {pipeline_mode = #tpu.pipeline_mode<synchronous>, transform_indices = @transform_3, window_bounds = array<i64: 256, 128>}, {pipeline_mode = #tpu.pipeline_mode<synchronous>, transform_indices = @transform_4, window_bounds = array<i64: 1, 128>}, {transform_indices = @transform_5, window_bounds = array<i64: 100, 128>}]} {
    %c0 = arith.constant 0 : index
    %c0_0 = arith.constant 0 : index
    %0 = vector.load %arg1[%c0, %c0_0] : memref<100x128xbf16, #tpu.memory_space<vmem>>, vector<100x128xbf16>
    %c0_1 = arith.constant 0 : index
    %c0_2 = arith.constant 0 : index
    %1 = vector.load %arg2[%c0_1, %c0_2] : memref<128x256xbf16, #tpu.memory_space<vmem>>, vector<128x256xbf16>
    %cst = arith.constant dense<0.000000e+00> : vector<100x256xf32>
    %2 = tpu.matmul %0, %1, %cst {dimension_numbers = #tpu.dot_dimension_numbers<[1], [0], [0], [1], [0, 0, 1, 1], [], []>} : vector<100x128xbf16>, vector<128x256xbf16>, vector<100x256xf32> -> vector<100x256xf32>
    %c0_3 = arith.constant 0 : index
    %c0_4 = arith.constant 0 : index
    %3 = vector.load %arg3[%c0_3, %c0_4] : memref<1x256xf32, #tpu.memory_space<vmem>>, vector<1x256xf32>
    %4 = vector.broadcast %3 : vector<1x256xf32> to vector<100x256xf32>
    %5 = arith.addf %2, %4 : vector<100x256xf32>
    %cst_5 = arith.constant 5.000000e-01 : f32
    %6 = vector.broadcast %cst_5 : f32 to vector<100x256xf32>
    %7 = arith.mulf %6, %5 : vector<100x256xf32>
    %cst_6 = arith.constant 4.471500e-02 : f32
    %8 = vector.broadcast %cst_6 : f32 to vector<100x256xf32>
    %9 = arith.mulf %8, %5 : vector<100x256xf32>
    %10 = arith.mulf %9, %5 : vector<100x256xf32>
    %11 = arith.mulf %10, %5 : vector<100x256xf32>
    %12 = arith.addf %5, %11 : vector<100x256xf32>
    %cst_7 = arith.constant 0.797884583 : f32
    %13 = vector.broadcast %cst_7 : f32 to vector<100x256xf32>
    %14 = arith.mulf %13, %12 : vector<100x256xf32>
    %15 = math.tanh %14 : vector<100x256xf32>
    %cst_8 = arith.constant 1.000000e+00 : f32
    %16 = vector.broadcast %cst_8 : f32 to vector<100x256xf32>
    %17 = arith.addf %16, %15 : vector<100x256xf32>
    %18 = arith.mulf %7, %17 : vector<100x256xf32>
    %19 = arith.truncf %18 : vector<100x256xf32> to vector<100x256xbf16>
    %c0_9 = arith.constant 0 : index
    %c0_10 = arith.constant 0 : index
    %20 = vector.load %arg4[%c0_9, %c0_10] : memref<256x128xbf16, #tpu.memory_space<vmem>>, vector<256x128xbf16>
    %cst_11 = arith.constant dense<0.000000e+00> : vector<100x128xf32>
    %21 = tpu.matmul %19, %20, %cst_11 {dimension_numbers = #tpu.dot_dimension_numbers<[1], [0], [0], [1], [0, 0, 1, 1], [], []>} : vector<100x256xbf16>, vector<256x128xbf16>, vector<100x128xf32> -> vector<100x128xf32>
    %c0_12 = arith.constant 0 : index
    %c0_13 = arith.constant 0 : index
    %22 = vector.load %arg5[%c0_12, %c0_13] : memref<1x128xf32, #tpu.memory_space<vmem>>, vector<1x128xf32>
    %23 = vector.broadcast %22 : vector<1x128xf32> to vector<100x128xf32>
    %24 = arith.addf %21, %23 : vector<100x128xf32>
    %c0_14 = arith.constant 0 : index
    %c0_15 = arith.constant 0 : index
    %25 = vector.load %arg6[%c0_14, %c0_15] : memref<100x128xf32, #tpu.memory_space<vmem>>, vector<100x128xf32>
    tpu.vector_store %arg6[%c0_14, %c0_15], %24 {strides = array<i32>} : memref<100x128xf32, #tpu.memory_space<vmem>>, vector<100x128xf32>,
    return
  }
  func.func @transform_0(%arg0: i32) -> (i32, i32) {
    %c0_i32 = arith.constant 0 : i32
    %c0_i32_0 = arith.constant 0 : i32
    return %arg0, %c0_i32 : i32, i32
  }
  func.func @transform_1(%arg0: i32) -> (i32, i32) {
    %c0_i32 = arith.constant 0 : i32
    %c0_i32_0 = arith.constant 0 : i32
    %c0_i32_1 = arith.constant 0 : i32
    return %c0_i32, %c0_i32_0 : i32, i32
  }
  func.func @transform_2(%arg0: i32) -> (i32, i32) {
    %c0_i32 = arith.constant 0 : i32
    %c0_i32_0 = arith.constant 0 : i32
    %c0_i32_1 = arith.constant 0 : i32
    return %c0_i32, %c0_i32_0 : i32, i32
  }
  func.func @transform_3(%arg0: i32) -> (i32, i32) {
    %c0_i32 = arith.constant 0 : i32
    %c0_i32_0 = arith.constant 0 : i32
    %c0_i32_1 = arith.constant 0 : i32
    return %c0_i32, %c0_i32_0 : i32, i32
  }
  func.func @transform_4(%arg0: i32) -> (i32, i32) {
    %c0_i32 = arith.constant 0 : i32
    %c0_i32_0 = arith.constant 0 : i32
    %c0_i32_1 = arith.constant 0 : i32
    return %c0_i32, %c0_i32_0 : i32, i32
  }
  func.func @transform_5(%arg0: i32) -> (i32, i32) {
    %c0_i32 = arith.constant 0 : i32
    %c0_i32_0 = arith.constant 0 : i32
    return %arg0, %c0_i32 : i32, i32
  }
}

module attributes {stable_mosaic.version = 11 : i64} {
  func.func @_ffn_kernel(%arg0: i32, %arg1: memref<100x128xbf16, #tpu.memory_space<vmem>>, %arg2: memref<128x256xbf16, #tpu.memory_space<vmem>>, %arg3: memref<1x256xf32, #tpu.memory_space<vmem>>, %arg4: memref<256x128xbf16, #tpu.memory_space<vmem>>, %arg5: memref<1x128xf32, #tpu.memory_space<vmem>>, %arg6: memref<100x128xf32, #tpu.memory_space<vmem>>) attributes {dimension_semantics = [#tpu.dimension_semantics<parallel>], iteration_bounds = array<i64: 1>, scalar_prefetch = 0 : i64, scratch_operands = 0 : i64, tpu.core_type = #tpu.core_type<tc>, window_params = [{transform_indices = @transform_0, window_bounds = array<i64: 100, 128>}, {pipeline_mode = #tpu.pipeline_mode<synchronous>, transform_indices = @transform_1, window_bounds = array<i64: 128, 256>}, {pipeline_mode = #tpu.pipeline_mode<synchronous>, transform_indices = @transform_2, window_bounds = array<i64: 1, 256>}, {pipeline_mode = #tpu.pipeline_mode<synchronous>, transform_indices = @transform_3, window_bounds = array<i64: 256, 128>}, {pipeline_mode = #tpu.pipeline_mode<synchronous>, transform_indices = @transform_4, window_bounds = array<i64: 1, 128>}, {transform_indices = @transform_5, window_bounds = array<i64: 100, 128>}]} {
    %c0 = arith.constant 0 : index
    %c0_0 = arith.constant 0 : index
    %0 = vector.load %arg1[%c0, %c0_0] : memref<100x128xbf16, #tpu.memory_space<vmem>>, vector<100x128xbf16>
    %c0_1 = arith.constant 0 : index
    %c0_2 = arith.constant 0 : index
    %1 = vector.load %arg2[%c0_1, %c0_2] : memref<128x256xbf16, #tpu.memory_space<vmem>>, vector<128x256xbf16>
    %cst = arith.constant dense<0.000000e+00> : vector<100x256xf32>
    %2 = tpu.matmul %0, %1, %cst {dimension_numbers = #tpu.dot_dimension_numbers<[1], [0], [0], [1], [0, 0, 1, 1], [], []>} : vector<100x128xbf16>, vector<128x256xbf16>, vector<100x256xf32> -> vector<100x256xf32>
    %c0_3 = arith.constant 0 : index
    %c0_4 = arith.constant 0 : index
    %3 = vector.load %arg3[%c0_3, %c0_4] : memref<1x256xf32, #tpu.memory_space<vmem>>, vector<1x256xf32>
    %4 = vector.broadcast %3 : vector<1x256xf32> to vector<100x256xf32>
    %5 = arith.addf %2, %4 : vector<100x256xf32>
    %cst_5 = arith.constant 5.000000e-01 : f32
    %6 = vector.broadcast %cst_5 : f32 to vector<100x256xf32>
    %7 = arith.mulf %6, %5 : vector<100x256xf32>
    %cst_6 = arith.constant 4.471500e-02 : f32
    %8 = vector.broadcast %cst_6 : f32 to vector<100x256xf32>
    %9 = arith.mulf %8, %5 : vector<100x256xf32>
    %10 = arith.mulf %9, %5 : vector<100x256xf32>
    %11 = arith.mulf %10, %5 : vector<100x256xf32>
    %12 = arith.addf %5, %11 : vector<100x256xf32>
    %cst_7 = arith.constant 0.797884583 : f32
    %13 = vector.broadcast %cst_7 : f32 to vector<100x256xf32>
    %14 = arith.mulf %13, %12 : vector<100x256xf32>
    %15 = math.tanh %14 : vector<100x256xf32>
    %cst_8 = arith.constant 1.000000e+00 : f32
    %16 = vector.broadcast %cst_8 : f32 to vector<100x256xf32>
    %17 = arith.addf %16, %15 : vector<100x256xf32>
    %18 = arith.mulf %7, %17 : vector<100x256xf32>
    %19 = arith.truncf %18 : vector<100x256xf32> to vector<100x256xbf16>
    %c0_9 = arith.constant 0 : index
    %c0_10 = arith.constant 0 : index
    %20 = vector.load %arg4[%c0_9, %c0_10] : memref<256x128xbf16, #tpu.memory_space<vmem>>, vector<256x128xbf16>
    %cst_11 = arith.constant dense<0.000000e+00> : vector<100x128xf32>
    %21 = tpu.matmul %19, %20, %cst_11 {dimension_numbers = #tpu.dot_dimension_numbers<[1], [0], [0], [1], [0, 0, 1, 1], [], []>} : vector<100x256xbf16>, vector<256x128xbf16>, vector<100x128xf32> -> vector<100x128xf32>
    %c0_12 = arith.constant 0 : index
    %c0_13 = arith.constant 0 : index
    %22 = vector.load %arg5[%c0_12, %c0_13] : memref<1x128xf32, #tpu.memory_space<vmem>>, vector<1x128xf32>
    %23 = vector.broadcast %22 : vector<1x128xf32> to vector<100x128xf32>
    %24 = arith.addf %21, %23 : vector<100x128xf32>
    %c0_14 = arith.constant 0 : index
    %c0_15 = arith.constant 0 : index
    %25 = vector.load %arg6[%c0_14, %c0_15] : memref<100x128xf32, #tpu.memory_space<vmem>>, vector<100x128xf32>
    tpu.vector_store %arg6[%c0_14, %c0_15], %24 {strides = array<i32>} : memref<100x128xf32, #tpu.memory_space<vmem>>, vector<100x128xf32>,
    return
  }
  func.func @transform_0(%arg0: i32) -> (i32, i32) {
    %c0_i32 = arith.constant 0 : i32
    %c0_i32_0 = arith.constant 0 : i32
    return %arg0, %c0_i32 : i32, i32
  }
  func.func @transform_1(%arg0: i32) -> (i32, i32) {
    %c0_i32 = arith.constant 0 : i32
    %c0_i32_0 = arith.constant 0 : i32
    %c0_i32_1 = arith.constant 0 : i32
    return %c0_i32, %c0_i32_0 : i32, i32
  }
  func.func @transform_2(%arg0: i32) -> (i32, i32) {
    %c0_i32 = arith.constant 0 : i32
    %c0_i32_0 = arith.constant 0 : i32
    %c0_i32_1 = arith.constant 0 : i32
    return %c0_i32, %c0_i32_0 : i32, i32
  }
  func.func @transform_3(%arg0: i32) -> (i32, i32) {
    %c0_i32 = arith.constant 0 : i32
    %c0_i32_0 = arith.constant 0 : i32
    %c0_i32_1 = arith.constant 0 : i32
    return %c0_i32, %c0_i32_0 : i32, i32
  }
  func.func @transform_4(%arg0: i32) -> (i32, i32) {
    %c0_i32 = arith.constant 0 : i32
    %c0_i32_0 = arith.constant 0 : i32
    %c0_i32_1 = arith.constant 0 : i32
    return %c0_i32, %c0_i32_0 : i32, i32
  }
  func.func @transform_5(%arg0: i32) -> (i32, i32) {
    %c0_i32 = arith.constant 0 : i32
    %c0_i32_0 = arith.constant 0 : i32
    return %arg0, %c0_i32 : i32, i32
  }
}

</mosaic_0001>

<bundles_post_ra>
// kernel: tpu_custom_call.1
= control target key start
LH: loop header
LB: loop body
LE: loop exit
PB: predicated region body
PF: predicated region fallthrough
CT: control target
= control target key end

     0   :  { %10 = vsyncpa [#allocation3], 0  ;;  %s1437_s0 = inlined_call_operand.hbm [shape: bf16[100,128], index: 0, kind: input, shape index: {}]   ;;  %s1438_s1 = inlined_call_operand.hbm [shape: bf16[128,256], index: 1, kind: input, shape index: {}]   ;;  %s1439_s2 = inlined_call_operand.vmem [shape: f32[1,256], index: 2, kind: input, shape index: {}]   ;;  %s1440_s3 = inlined_call_operand.hbm [shape: bf16[256,128], index: 3, kind: input, shape index: {}]   ;;  %s1441_s4 = inlined_call_operand.vmem [shape: f32[1,128], index: 4, kind: input, shape index: {}]   ;;  %s1442_s5 = inlined_call_operand.hbm [shape: f32[100,128], index: 5, kind: output, shape index: {}]  }
   0x1   :  { %11 = vsyncpa [#allocation6], 0 }
   0x2   :  { %12 = vsyncpa [#allocation4], 0  ;;  %s1127_s18 = smov [#allocation5]   ;;  %s1033_s22 = scalar_lea.hbm %s1438_s1, 2048 }
   0x3   :  { %s30_s19 = sshll.u32 %s1127_s18, 4  ;;  %p1034_p0 = scmp.ne.s32.totalorder %s1438_s1, %s1033_s22  ;;  %s31_s19 = int_to_ptr.vmem [resolvable:$true] %s30_s19 }
   0x4   :  { %p1037_p1 = scmp.lt.u32.totalorder %s1033_s22, %s1438_s1 }
   0x6   :  { %p1039_p2 = pnand %p1037_p1, %p1034_p0 }
   0x8   :  { %1042 = shalt.err (!%p1039_p2)
}
   0x9   :  { %s1043_s27 = scalar_lea.vmem %s31_s19, 2048  ;;  %p1048_p4 = scmp.lt.s32.totalorder %s31_s19, %s31_s19 }
   0xa   :  { %p1044_p3 = scmp.ne.s32.totalorder %s31_s19, %s1043_s27  ;;  %p1049_p5 = scmp.lt.s32.totalorder %s1043_s27, %s1043_s27 }
   0xc   :  { %p1050_p6 = por %p1049_p5, %p1048_p4 }
   0xe   :  { %p1051_p7 = pnand %p1050_p6, %p1044_p3 }
  0x10   :  { %1054 = shalt.err (!%p1051_p7)
}
  0x11   :  { %s1128_s28 = smov 128   ;;  %s1129_s29 = smov 8  }
  0x12   :  { %36 = dma.hbm_to_vmem [thread:$0]  %s1438_s1, 2048, %s31_s19, [#allocation6], %s1128_s28, %s1128_s28, %s1129_s29  }
  0x13   :  { %s1130_s7 = smov [#allocation2]   ;;  %s1055_s11 = scalar_lea.hbm %s1437_s0, 832 }
  0x14   :  { %s18_s8 = sshll.u32 %s1130_s7, 4  ;;  %p1056_p8 = scmp.ne.s32.totalorder %s1437_s0, %s1055_s11  ;;  %s19_s8 = int_to_ptr.vmem [resolvable:$true] %s18_s8 }
  0x15   :  { %p1059_p9 = scmp.lt.u32.totalorder %s1055_s11, %s1437_s0 }
  0x17   :  { %p1061_p10 = pnand %p1059_p9, %p1056_p8 }
  0x19   :  { %1064 = shalt.err (!%p1061_p10)
}
  0x1a   :  { %s1065_s16 = scalar_lea.vmem %s19_s8, 832  ;;  %p1070_p12 = scmp.lt.s32.totalorder %s19_s8, %s19_s8 }
  0x1b   :  { %p1066_p11 = scmp.ne.s32.totalorder %s19_s8, %s1065_s16  ;;  %p1071_p13 = scmp.lt.s32.totalorder %s1065_s16, %s1065_s16 }
  0x1d   :  { %p1072_p0 = por %p1071_p13, %p1070_p12 }
  0x1f   :  { %p1073_p1 = pnand %p1072_p0, %p1066_p11 }
  0x21   :  { %1076 = shalt.err (!%p1073_p1)
}
  0x22   :  { %s1131_s1 = smov 64   ;;  %s1132_s17 = smov 4  }
  0x23   :  { %24 = dma.hbm_to_vmem [thread:$0]  %s1437_s0, 832, %s19_s8, [#allocation3], %s1131_s1, %s1131_s1, %s1132_s17  }
  0x24   :  { %s1133_s20 = smov [#allocation7]   ;;  %s1077_s24 = scalar_lea.hbm %s1440_s3, 2048 }
  0x25   :  { %s44_s21 = sshll.u32 %s1133_s20, 4  ;;  %p1078_p2 = scmp.ne.s32.totalorder %s1440_s3, %s1077_s24  ;;  %s45_s21 = int_to_ptr.vmem [resolvable:$true] %s44_s21 }
  0x26   :  { %p1081_p3 = scmp.lt.u32.totalorder %s1077_s24, %s1440_s3 }
  0x28   :  { %p1083_p4 = pnand %p1081_p3, %p1078_p2 }
  0x2a   :  { %1086 = shalt.err (!%p1083_p4)
}
  0x2b   :  { %s1087_s6 = scalar_lea.vmem %s45_s21, 2048  ;;  %p1092_p6 = scmp.lt.s32.totalorder %s45_s21, %s45_s21 }
  0x2c   :  { %p1088_p5 = scmp.ne.s32.totalorder %s45_s21, %s1087_s6  ;;  %p1093_p7 = scmp.lt.s32.totalorder %s1087_s6, %s1087_s6 }
  0x2e   :  { %p1094_p8 = por %p1093_p7, %p1092_p6 }
  0x30   :  { %p1095_p9 = pnand %p1094_p8, %p1088_p5 }
  0x32   :  { %1098 = shalt.err (!%p1095_p9)
}
  0x33   :  { %50 = dma.hbm_to_vmem [thread:$0]  %s1440_s3, 2048, %s45_s21, [#allocation6], %s1131_s1, %s1131_s1, %s1132_s17  }
  0x34   :  { %1121 = dma.done.wait [#allocation3], 832  }
  0x35   :  { %1122 = vsyncadd [#allocation3], 4294966464 }
  0x36   :  { %1123 = dma.done.wait [#allocation6], 4096  }
  0x37   :  { %1124 = vsyncadd [#allocation6], 4294963200  ;;  %v1134_v0 = vmov 0   ;;  %v934_v1 = vld [vmem:[#allocation5 + $0x4] ss:$8 sps:$4 sm:$0xff]   ;;  %v959_v18 = vld [vmem:[#allocation2 + $0x8] sm:$0xff]   ;;  %v94_v40 = vlaneseq }
  0x38   :  { %256 = vmatprep.mubr.bf16.mxu0 %v1134_v0  ;;  %v936_v2 = vld [vmem:[#allocation5] ss:$8 sps:$4 sm:$0xff]   ;;  %224 = vmatprep.subr.bf16.mxu0 %v934_v1  ;;  %v937_v3 = vld [vmem:[#allocation5 + $0x14] ss:$8 sps:$4 sm:$0xff]   ;;  %v939_v4 = vld [vmem:[#allocation5 + $0x10] ss:$8 sps:$4 sm:$0xff]  }
  0x39   :  { %225 = vmatpush1.bf16.msra.mxu0 %v936_v2  ;;  %v940_v5 = vld [vmem:[#allocation5 + $0x24] ss:$8 sps:$4 sm:$0xff]   ;;  %v942_v6 = vld [vmem:[#allocation5 + $0x20] ss:$8 sps:$4 sm:$0xff]   ;;  %v943_v7 = vld [vmem:[#allocation5 + $0x34] ss:$8 sps:$4 sm:$0xff]  }
  0x3a   :  { %226 = vmatprep.subr.bf16.mxu0 %v937_v3  ;;  %v945_v8 = vld [vmem:[#allocation5 + $0x30] ss:$8 sps:$4 sm:$0xff]   ;;  %v946_v9 = vld [vmem:[#allocation5 + $0x44] ss:$8 sps:$4 sm:$0xff]   ;;  %v948_v10 = vld [vmem:[#allocation5 + $0x40] ss:$8 sps:$4 sm:$0xff]  }
  0x3b   :  { %v949_v11 = vld [vmem:[#allocation5 + $0x54] ss:$8 sps:$4 sm:$0xff]   ;;  %v951_v12 = vld [vmem:[#allocation5 + $0x50] ss:$8 sps:$4 sm:$0xff]   ;;  %v952_v13 = vld [vmem:[#allocation5 + $0x64] ss:$8 sps:$4 sm:$0xff]  }
  0x3c   :  { %v954_v14 = vld [vmem:[#allocation5 + $0x60] ss:$8 sps:$4 sm:$0xff]   ;;  %v955_v15 = vld [vmem:[#allocation5 + $0x74] ss:$8 sps:$4 sm:$0xff]   ;;  %v957_v16 = vld [vmem:[#allocation5 + $0x70] ss:$8 sps:$4 sm:$0xff]  }
  0x3d   :  { %227 = vmatpush1.bf16.msra.mxu0 %v939_v4  ;;  %v958_v17 = vld [vmem:[#allocation2] sm:$0xff]   ;;  %v960_v19 = vld [vmem:[#allocation2 + $0x10] sm:$0xff]   ;;  %v961_v20 = vld [vmem:[#allocation2 + $0x18] sm:$0xff]   ;;  %v95_v41 = vshrl.u32 %v94_v40, 7 }
  0x3e   :  { %228 = vmatprep.subr.bf16.mxu0 %v940_v5  ;;  %v962_v21 = vld [vmem:[#allocation2 + $0x20] sm:$0xff]   ;;  %v963_v22 = vld [vmem:[#allocation2 + $0x28] sm:$0xff]   ;;  %v964_v23 = vld [vmem:[#allocation2 + $0x30] ss:$0 sps:$4 sm:$0x33]  }
  0x3f   :  { %v965_v24 = vld [vmem:[#allocation7 + $0x40] sm:$0xff]   ;;  %v967_v26 = vld [vmem:[#allocation7 + $0x48] sm:$0xff]   ;;  %v969_v28 = vld [vmem:[#allocation7 + $0x50] sm:$0xff]   ;;  %v96_v42 = vsub.s32 0, %v95_v41  ;;  %v100_v44 = vsub.s32 1, %v95_v41 }
  0x40   :  { %v966_v25 = vld [vmem:[#allocation7] sm:$0xff]   ;;  %867 = vmatprep.subr.bf16.mxu1 %v965_v24  ;;  %v968_v27 = vld [vmem:[#allocation7 + $0x8] sm:$0xff]   ;;  %v970_v29 = vld [vmem:[#allocation7 + $0x10] sm:$0xff]  }
  0x41   :  { %229 = vmatpush1.bf16.msra.mxu0 %v942_v6  ;;  %868 = vmatpush3.bf16.msra.mxu1 %v966_v25  ;;  %v971_v30 = vld [vmem:[#allocation7 + $0x58] sm:$0xff]   ;;  %v973_v32 = vld [vmem:[#allocation7 + $0x60] sm:$0xff]   ;;  %v975_v34 = vld [vmem:[#allocation7 + $0x68] sm:$0xff]  }
  0x42   :  { %230 = vmatprep.subr.bf16.mxu0 %v943_v7  ;;  %869 = vmatprep.subr.bf16.mxu1 %v967_v26  ;;  %v972_v31 = vld [vmem:[#allocation7 + $0x18] sm:$0xff]   ;;  %v974_v33 = vld [vmem:[#allocation7 + $0x20] sm:$0xff]   ;;  %v976_v35 = vld [vmem:[#allocation7 + $0x28] sm:$0xff]  }
  0x43   :  { %v977_v36 = vld [vmem:[#allocation7 + $0x70] sm:$0xff]   ;;  %v979_v38 = vld [vmem:[#allocation7 + $0x78] sm:$0xff]   ;;  %v92_v43 = vld [vmem:[%s1439_s2] sm:$0x3] }
  0x44   :  { %v978_v37 = vld [vmem:[#allocation7 + $0x30] sm:$0xff]   ;;  %v980_v39 = vld [vmem:[#allocation7 + $0x38] sm:$0xff]   ;;  %v1208_v45 = vrot.slane %v92_v43, %v96_v42  ;;  %v1210_v46 = vrot.slane %v92_v43, %v100_v44 }
  0x45   :  { %231 = vmatpush1.bf16.msra.mxu0 %v945_v8  ;;  %870 = vmatpush3.bf16.msra.mxu1 %v968_v27 }
  0x46   :  { %232 = vmatprep.subr.bf16.mxu0 %v946_v9  ;;  %871 = vmatprep.subr.bf16.mxu1 %v969_v28 }
  0x49   :  { %233 = vmatpush1.bf16.msra.mxu0 %v948_v10  ;;  %872 = vmatpush3.bf16.msra.mxu1 %v970_v29 }
  0x4a   :  { %234 = vmatprep.subr.bf16.mxu0 %v949_v11  ;;  %873 = vmatprep.subr.bf16.mxu1 %v971_v30 }
  0x4d   :  { %235 = vmatpush1.bf16.msra.mxu0 %v951_v12  ;;  %874 = vmatpush3.bf16.msra.mxu1 %v972_v31 }
  0x4e   :  { %236 = vmatprep.subr.bf16.mxu0 %v952_v13  ;;  %875 = vmatprep.subr.bf16.mxu1 %v973_v32 }
  0x51   :  { %237 = vmatpush1.bf16.msra.mxu0 %v954_v14  ;;  %876 = vmatpush3.bf16.msra.mxu1 %v974_v33 }
  0x52   :  { %238 = vmatprep.subr.bf16.mxu0 %v955_v15  ;;  %877 = vmatprep.subr.bf16.mxu1 %v975_v34 }
  0x55   :  { %239 = vmatpush1.bf16.msra.mxu0 %v957_v16  ;;  %878 = vmatpush3.bf16.msra.mxu1 %v976_v35 }
  0x56   :  { %879 = vmatprep.subr.bf16.mxu1 %v977_v36 }
  0x58   :  { %257 = vmatmul.mubr.bf16.vlgmr.msra.gmra.mrb[0].mxu0 %v958_v17 }
  0x59   :  { %266 = vmatprep.mubr.bf16.mxu0 %v1134_v0  ;;  %880 = vmatpush3.bf16.msra.mxu1 %v978_v37 }
  0x5a   :  { %881 = vmatprep.subr.bf16.mxu1 %v979_v38 }
  0x5d   :  { %882 = vmatpush3.bf16.msra.mxu1 %v980_v39 }
  0x60   :  { %267 = vmatmul.mubr.bf16.gmra.mrb[4].mxu0 %v959_v18 }
  0x61   :  { %276 = vmatprep.mubr.bf16.mxu0 %v1134_v0 }
  0x68   :  { %277 = vmatmul.mubr.bf16.gmra.mrb[8].mxu0 %v960_v19 }
  0x69   :  { %286 = vmatprep.mubr.bf16.mxu0 %v1134_v0 }
  0x70   :  { %287 = vmatmul.mubr.bf16.gmra.mrb[12].mxu0 %v961_v20 }
  0x71   :  { %296 = vmatprep.mubr.bf16.mxu0 %v1134_v0 }
  0x78   :  { %297 = vmatmul.mubr.bf16.gmra.mrb[16].mxu0 %v962_v21 }
  0x79   :  { %306 = vmatprep.mubr.bf16.mxu0 %v1134_v0 }
  0x80   :  { %307 = vmatmul.mubr.bf16.gmra.mrb[20].mxu0 %v963_v22 }
  0x81   :  { %316 = vmatprep.mubr.bf16.mxu0 %v1134_v0 }
  0x88   :  { %317 = vmatmul.mubr.bf16.gmra.mrb[24].mxu0 %v964_v23 }
 0x12b   :  { %v258_v47 = vpop.f32.mrb[0].mxu0 }
 0x12c   :  { %v259_v48 = vadd.f32 %v258_v47, %v1208_v45  ;;  %v260_v49 = vpop.f32.mrb[1].mxu0 }
 0x12d   :  { %v261_v50 = vadd.f32 %v260_v49, %v1210_v46  ;;  %v262_v51 = vpop.f32.mrb[2].mxu0 }
 0x12e   :  { %v351_v52 = vmul.f32 0.044715, %v259_v48  ;;  %v1215_v53 = vadd.f32 %v262_v51, %v1208_v45  ;;  %v264_v54 = vpop.f32.mrb[3].mxu0  ;;  %v325_v39 = vmul.f32 0.5, %v259_v48 }
 0x12f   :  { %v352_v55 = vmul.f32 0.044715, %v261_v50  ;;  %v1218_v56 = vadd.f32 %v264_v54, %v1210_v46  ;;  %v326_v38 = vmul.f32 0.5, %v261_v50 }
 0x130   :  { %v377_v57 = vmul.f32 %v351_v52, %v259_v48  ;;  %v353_v58 = vmul.f32 0.044715, %v1215_v53 }
 0x131   :  { %v354_v59 = vmul.f32 0.044715, %v1218_v56  ;;  %v378_v60 = vmul.f32 %v352_v55, %v261_v50 }
 0x132   :  { %v403_v61 = vmul.f32 %v377_v57, %v259_v48  ;;  %v379_v62 = vmul.f32 %v353_v58, %v1215_v53  ;;  %v328_v57 = vmul.f32 0.5, %v1218_v56  ;;  %v327_v58 = vmul.f32 0.5, %v1215_v53 }
 0x133   :  { %v268_v63 = vpop.f32.mrb[4].mxu0  ;;  %v380_v0 = vmul.f32 %v354_v59, %v1218_v56  ;;  %v404_v1 = vmul.f32 %v378_v60, %v261_v50 }
 0x134   :  { %v405_v2 = vmul.f32 %v379_v62, %v1215_v53  ;;  %v1226_v3 = vadd.f32 %v268_v63, %v1208_v45  ;;  %v270_v4 = vpop.f32.mrb[5].mxu0  ;;  %v429_v5 = vadd.f32 %v403_v61, %v259_v48 }
 0x135   :  { %v271_v6 = vadd.f32 %v270_v4, %v1210_v46  ;;  %v272_v7 = vpop.f32.mrb[6].mxu0  ;;  %v406_v8 = vmul.f32 %v380_v0, %v1218_v56  ;;  %v430_v9 = vadd.f32 %v404_v1, %v261_v50 }
 0x136   :  { %v355_v10 = vmul.f32 0.044715, %v1226_v3  ;;  %v1232_v11 = vadd.f32 %v272_v7, %v1208_v45  ;;  %v274_v12 = vpop.f32.mrb[7].mxu0  ;;  %v431_v13 = vadd.f32 %v405_v2, %v1215_v53  ;;  %v455_v14 = vmul.f32 0.7978846, %v429_v5 }
 0x137   :  { %v356_v15 = vmul.f32 0.044715, %v271_v6  ;;  %v275_v16 = vadd.f32 %v274_v12, %v1210_v46  ;;  %v432_v17 = vadd.f32 %v406_v8, %v1218_v56  ;;  %v456_v18 = vmul.f32 0.7978846, %v430_v9 }
 0x138   :  { %v381_v19 = vmul.f32 %v355_v10, %v1226_v3  ;;  %v357_v20 = vmul.f32 0.044715, %v1232_v11  ;;  %v457_v21 = vmul.f32 0.7978846, %v431_v13  ;;  %981 = vtanh.f32 %v455_v14 }
 0x139   :  { %v382_v22 = vmul.f32 %v356_v15, %v271_v6  ;;  %v358_v23 = vmul.f32 0.044715, %v275_v16  ;;  %v458_v24 = vmul.f32 0.7978846, %v432_v17  ;;  %983 = vtanh.f32 %v456_v18 }
 0x13a   :  { %v407_v25 = vmul.f32 %v381_v19, %v1226_v3  ;;  %v383_v26 = vmul.f32 %v357_v20, %v1232_v11  ;;  %985 = vtanh.f32 %v457_v21  ;;  %v1261_v59 = vmul.f32 0.5, %v271_v6 }
 0x13b   :  { %v408_v27 = vmul.f32 %v382_v22, %v271_v6  ;;  %v384_v28 = vmul.f32 %v358_v23, %v275_v16  ;;  %v278_v29 = vpop.f32.mrb[8].mxu0  ;;  %987 = vtanh.f32 %v458_v24  ;;  %v1264_v0 = vmul.f32 0.5, %v275_v16 }
 0x13c   :  { %v409_v30 = vmul.f32 %v383_v26, %v1232_v11  ;;  %v280_v31 = vpop.f32.mrb[9].mxu0  ;;  %v433_v36 = vadd.f32 %v407_v25, %v1226_v3  ;;  %v1252_v47 = vadd.f32 %v278_v29, %v1208_v45 }
 0x13d   :  { %v410_v32 = vmul.f32 %v384_v28, %v275_v16  ;;  %v1243_v33 = vadd.f32 %v280_v31, %v1210_v46  ;;  %v282_v34 = vpop.f32.mrb[10].mxu0  ;;  %v434_v35 = vadd.f32 %v408_v27, %v271_v6 }
 0x13e   :  { %v284_v37 = vpop.f32.mrb[11].mxu0  ;;  %v435_v40 = vadd.f32 %v409_v30, %v1232_v11  ;;  %v1255_v49 = vadd.f32 %v282_v34, %v1208_v45  ;;  %v459_v51 = vmul.f32 0.7978846, %v433_v36  ;;  %v359_v2 = vmul.f32 0.044715, %v1252_v47 }
 0x13f   :  { %v360_v41 = vmul.f32 0.044715, %v1243_v33  ;;  %v1249_v42 = vadd.f32 %v284_v37, %v1210_v46  ;;  %v436_v43 = vadd.f32 %v410_v32, %v275_v16  ;;  %v460_v44 = vmul.f32 0.7978846, %v434_v35 }
 0x140   :  { %v461_v52 = vmul.f32 0.7978846, %v435_v40  ;;  %v361_v6 = vmul.f32 0.044715, %v1255_v49  ;;  %v329_v16 = vmul.f32 0.5, %v1226_v3  ;;  %v385_v21 = vmul.f32 %v359_v2, %v1252_v47 }
 0x141   :  { %v386_v50 = vmul.f32 %v360_v41, %v1243_v33  ;;  %v362_v48 = vmul.f32 0.044715, %v1249_v42  ;;  %v462_v54 = vmul.f32 0.7978846, %v436_v43  ;;  %989 = vtanh.f32 %v460_v44 }
 0x142   :  { %v982_v55 = vpop.eup %981  ;;  %991 = vtanh.f32 %v459_v51  ;;  %v387_v25 = vmul.f32 %v361_v6, %v1255_v49  ;;  %v331_v3 = vmul.f32 0.5, %v1232_v11  ;;  %v411_v11 = vmul.f32 %v385_v21, %v1252_v47 }
 0x143   :  { %v984_v60 = vpop.eup %983  ;;  %v388_v61 = vmul.f32 %v362_v48, %v1249_v42  ;;  %v288_v62 = vpop.f32.mrb[12].mxu0  ;;  %v507_v63 = vadd.f32 1.0, %v982_v55  ;;  %993 = vtanh.f32 %v462_v54  ;;  %v412_v4 = vmul.f32 %v386_v50, %v1243_v33 }
 0x144   :  { %v986_v1 = vpop.eup %985  ;;  %v290_v5 = vpop.f32.mrb[13].mxu0  ;;  %v508_v56 = vadd.f32 1.0, %v984_v60  ;;  %995 = vtanh.f32 %v461_v52  ;;  %v1274_v12 = vadd.f32 %v288_v62, %v1208_v45  ;;  %v1298_v43 = vmul.f32 0.5, %v1243_v33 }
 0x145   :  { %v988_v53 = vpop.eup %987  ;;  %v414_v7 = vmul.f32 %v388_v61, %v1249_v42  ;;  %v1271_v8 = vadd.f32 %v290_v5, %v1210_v46  ;;  %v292_v9 = vpop.f32.mrb[14].mxu0  ;;  %v509_v10 = vadd.f32 1.0, %v986_v1  ;;  %v533_v15 = vmul.f32 %v507_v63, %v325_v39 }
 0x146   :  { %v294_v13 = vpop.f32.mrb[15].mxu0  ;;  %v510_v14 = vadd.f32 1.0, %v988_v53  ;;  %v1279_v18 = vadd.f32 %v292_v9, %v1208_v45  ;;  %v534_v22 = vmul.f32 %v508_v56, %v326_v38  ;;  %v438_v24 = vadd.f32 %v412_v4, %v1243_v33 }
 0x147   :  { %v364_v17 = vmul.f32 0.044715, %v1271_v8  ;;  %v1282_v19 = vadd.f32 %v294_v13, %v1210_v46  ;;  %v535_v20 = vmul.f32 %v509_v10, %v327_v58  ;;  %v440_v27 = vadd.f32 %v414_v7, %v1249_v42 }
 0x148   :  { %v536_v23 = vmul.f32 %v510_v14, %v328_v57  ;;  %v363_v28 = vmul.f32 0.044715, %v1274_v12  ;;  %v464_v31 = vmul.f32 0.7978846, %v438_v24  ;;  %v365_v35 = vmul.f32 0.044715, %v1279_v18 }
 0x149   :  { %v559_v26 = vpack.c.bf16 %v535_v20, %v533_v15  ;;  %v366_v29 = vmul.f32 0.044715, %v1282_v19  ;;  %v390_v34 = vmul.f32 %v364_v17, %v1271_v8  ;;  %v466_v37 = vmul.f32 0.7978846, %v440_v27 }
 0x14a   :  { %v560_v30 = vpack.c.bf16 %v536_v23, %v534_v22  ;;  %v1294_v38 = vmul.f32 0.5, %v1252_v47  ;;  %997 = vtanh.f32 %v464_v31  ;;  %v413_v51 = vmul.f32 %v387_v25, %v1255_v49 }
 0x14b   :  { %v990_v32 = vpop.eup %989  ;;  %v298_v36 = vpop.f32.mrb[16].mxu0  ;;  %999 = vtanh.f32 %v466_v37  ;;  %v389_v55 = vmul.f32 %v363_v28, %v1274_v12  ;;  %v392_v57 = vmul.f32 %v366_v29, %v1282_v19  ;;  %v416_v61 = vmul.f32 %v390_v34, %v1271_v8 }
 0x14c   :  { %v992_v39 = vpop.eup %991  ;;  %v300_v40 = vpop.f32.mrb[17].mxu0  ;;  %740 = vmatprep.mubr.bf16.mxu1 %v560_v30  ;;  %v512_v41 = vadd.f32 1.0, %v990_v32  ;;  %v1307_v58 = vadd.f32 %v298_v36, %v1208_v45  ;;  %v391_v62 = vmul.f32 %v365_v35, %v1279_v18  ;;  %v437_v56 = vadd.f32 %v411_v11, %v1252_v47 }
 0x14d   :  { %v994_v44 = vpop.eup %993  ;;  %v1302_v52 = vadd.f32 %v300_v40, %v1210_v46  ;;  %v302_v50 = vpop.f32.mrb[18].mxu0  ;;  %741 = vmatmul.mubr.bf16.vlgmr.msra.gmra.mrb[0].mxu1 %v559_v26  ;;  %v511_v48 = vadd.f32 1.0, %v992_v39  ;;  %v439_v9 = vadd.f32 %v413_v51, %v1255_v49  ;;  %v418_v10 = vmul.f32 %v392_v57, %v1282_v19 }
 0x14e   :  { %v996_v54 = vpop.eup %995  ;;  %v304_v33 = vpop.f32.mrb[19].mxu0  ;;  %v514_v60 = vadd.f32 1.0, %v994_v44  ;;  %v1315_v2 = vadd.f32 %v302_v50, %v1208_v45  ;;  %v538_v4 = vmul.f32 %v512_v41, %v1261_v59  ;;  %v367_v13 = vmul.f32 0.044715, %v1307_v58 }
 0x14f   :  { %v1312_v63 = vadd.f32 %v304_v33, %v1210_v46  ;;  %v513_v1 = vadd.f32 1.0, %v996_v54  ;;  %v368_v53 = vmul.f32 0.044715, %v1302_v52  ;;  %v537_v6 = vmul.f32 %v511_v48, %v329_v16 }
 0x150   :  { %v540_v5 = vmul.f32 %v514_v60, %v1264_v0  ;;  %v463_v15 = vmul.f32 0.7978846, %v437_v56  ;;  %v336_v0 = vmul.f32 0.5, %v1249_v42  ;;  %v465_v21 = vmul.f32 0.7978846, %v439_v9 }
 0x151   :  { %v539_v7 = vmul.f32 %v513_v1, %v331_v3  ;;  %v370_v17 = vmul.f32 0.044715, %v1312_v63  ;;  %v415_v47 = vmul.f32 %v389_v55, %v1274_v12  ;;  %v369_v16 = vmul.f32 0.044715, %v1315_v2 }
 0x152   :  { %v562_v14 = vpack.c.bf16 %v540_v5, %v538_v4  ;;  %1001 = vtanh.f32 %v463_v15  ;;  %v417_v24 = vmul.f32 %v391_v62, %v1279_v18  ;;  %v394_v25 = vmul.f32 %v368_v53, %v1302_v52 }
 0x153   :  { %v308_v20 = vpop.f32.mrb[20].mxu0  ;;  %v561_v59 = vpack.c.bf16 %v539_v7, %v537_v6  ;;  %1003 = vtanh.f32 %v465_v21  ;;  %v393_v27 = vmul.f32 %v367_v13, %v1307_v58  ;;  %v442_v30 = vadd.f32 %v416_v61, %v1271_v8 }
 0x154   :  { %v1329_v22 = vadd.f32 %v308_v20, %v1208_v45  ;;  %v310_v23 = vpop.f32.mrb[21].mxu0  ;;  %748 = vmatprep.mubr.bf16.mxu1 %v562_v14  ;;  %v998_v42 = vpop.eup %997  ;;  %v444_v31 = vadd.f32 %v418_v10, %v1282_v19  ;;  %v396_v34 = vmul.f32 %v370_v17, %v1312_v63  ;;  %v395_v39 = vmul.f32 %v369_v16, %v1315_v2 }
 0x155   :  { %v1334_v26 = vadd.f32 %v310_v23, %v1210_v46  ;;  %v312_v3 = vpop.f32.mrb[22].mxu0  ;;  %749 = vmatmul.mubr.bf16.gmra.mrb[4].mxu1 %v561_v59  ;;  %v1000_v32 = vpop.eup %999  ;;  %v516_v37 = vadd.f32 1.0, %v998_v42  ;;  %v468_v41 = vmul.f32 0.7978846, %v442_v30  ;;  %v420_v44 = vmul.f32 %v394_v25, %v1302_v52 }
 0x156   :  { %v1338_v28 = vadd.f32 %v312_v3, %v1208_v45  ;;  %v314_v29 = vpop.f32.mrb[23].mxu0  ;;  %v371_v11 = vmul.f32 0.044715, %v1329_v22  ;;  %v518_v40 = vadd.f32 1.0, %v1000_v32  ;;  %v470_v48 = vmul.f32 0.7978846, %v444_v31 }
 0x157   :  { %v372_v35 = vmul.f32 0.044715, %v1334_v26  ;;  %v1345_v36 = vadd.f32 %v314_v29, %v1210_v46  ;;  %v542_v55 = vmul.f32 %v516_v37, %v1298_v43  ;;  %1005 = vtanh.f32 %v468_v41 }
 0x158   :  { %v373_v51 = vmul.f32 0.044715, %v1338_v28  ;;  %v544_v57 = vmul.f32 %v518_v40, %v336_v0  ;;  %v422_v33 = vmul.f32 %v396_v34, %v1312_v63  ;;  %v335_v62 = vmul.f32 0.5, %v1255_v49 }
 0x159   :  { %v374_v50 = vmul.f32 0.044715, %v1345_v36  ;;  %v398_v54 = vmul.f32 %v372_v35, %v1334_v26  ;;  %1007 = vtanh.f32 %v470_v48  ;;  %v419_v1 = vmul.f32 %v393_v27, %v1307_v58 }
 0x15a   :  { %v421_v4 = vmul.f32 %v395_v39, %v1315_v2  ;;  %v564_v56 = vpack.c.bf16 %v544_v57, %v542_v55  ;;  %v441_v53 = vadd.f32 %v415_v47, %v1274_v12  ;;  %v397_v43 = vmul.f32 %v371_v11, %v1329_v22 }
 0x15b   :  { %v400_v60 = vmul.f32 %v374_v50, %v1345_v36  ;;  %v318_v61 = vpop.f32.mrb[24].mxu0  ;;  %v399_v6 = vmul.f32 %v373_v51, %v1338_v28  ;;  %v443_v10 = vadd.f32 %v417_v24, %v1279_v18  ;;  %v424_v13 = vmul.f32 %v398_v54, %v1334_v26 }
 0x15c   :  { %v320_v5 = vpop.f32.mrb[25].mxu0  ;;  %v1002_v49 = vpop.eup %1001  ;;  %v1368_v14 = vadd.f32 %v318_v61, %v1208_v45  ;;  %756 = vmatprep.mubr.bf16.mxu1 %v564_v56  ;;  %v467_v17 = vmul.f32 0.7978846, %v441_v53  ;;  %v446_v20 = vadd.f32 %v420_v44, %v1302_v52  ;;  %v448_v47 = vadd.f32 %v422_v33, %v1312_v63 }
 0x15d   :  { %v1363_v7 = vadd.f32 %v320_v5, %v1210_v46  ;;  %v322_v9 = vpop.f32.mrb[26].mxu0  ;;  %v1004_v59 = vpop.eup %1003  ;;  %v426_v0 = vmul.f32 %v400_v60, %v1345_v36  ;;  %v515_v21 = vadd.f32 1.0, %v1002_v49  ;;  %v469_v46 = vmul.f32 0.7978846, %v443_v10 }
 0x15e   :  { %v323_v15 = vpop.f32.mrb[27].mxu0  ;;  %v517_v23 = vadd.f32 1.0, %v1004_v59  ;;  %1009 = vtanh.f32 %v467_v17  ;;  %v472_v24 = vmul.f32 0.7978846, %v446_v20  ;;  %v423_v45 = vmul.f32 %v397_v43, %v1329_v22 }
 0x15f   :  { %v376_v16 = vmul.f32 0.044715, %v1363_v7  ;;  %v338_v25 = vmul.f32 0.5, %v1271_v8  ;;  %1011 = vtanh.f32 %v469_v46  ;;  %v474_v3 = vmul.f32 0.7978846, %v448_v47 }
 0x160   :  { %v375_v42 = vmul.f32 0.044715, %v1368_v14  ;;  %v541_v27 = vmul.f32 %v515_v21, %v1294_v38  ;;  %v543_v29 = vmul.f32 %v517_v23, %v335_v62  ;;  %1013 = vtanh.f32 %v472_v24 }
 0x161   :  { %v425_v30 = vmul.f32 %v399_v6, %v1338_v28  ;;  %1015 = vtanh.f32 %v474_v3  ;;  %v445_v31 = vadd.f32 %v419_v1, %v1307_v58  ;;  %v447_v32 = vadd.f32 %v421_v4, %v1315_v2  ;;  %v1006_v34 = vpop.eup %1005 }
 0x162   :  { %v402_v35 = vmul.f32 %v376_v16, %v1363_v7  ;;  %v563_v37 = vpack.c.bf16 %v543_v29, %v541_v27  ;;  %v450_v8 = vadd.f32 %v424_v13, %v1334_v26  ;;  %v452_v39 = vadd.f32 %v426_v0, %v1345_v36 }
 0x163   :  { %v1008_v11 = vpop.eup %1007  ;;  %v340_v38 = vmul.f32 0.5, %v1282_v19  ;;  %v520_v40 = vadd.f32 1.0, %v1006_v34  ;;  %v471_v41 = vmul.f32 0.7978846, %v445_v31  ;;  %v473_v44 = vmul.f32 0.7978846, %v447_v32 }
 0x164   :  { %v401_v51 = vmul.f32 %v375_v42, %v1368_v14  ;;  %757 = vmatmul.mubr.bf16.gmra.mrb[8].mxu1 %v563_v37  ;;  %v522_v50 = vadd.f32 1.0, %v1008_v11  ;;  %v476_v48 = vmul.f32 0.7978846, %v450_v8  ;;  %v478_v54 = vmul.f32 0.7978846, %v452_v39 }
 0x165   :  { %1017 = vtanh.f32 %v471_v41  ;;  %v449_v55 = vadd.f32 %v423_v45, %v1329_v22  ;;  %v451_v57 = vadd.f32 %v425_v30, %v1338_v28  ;;  %v546_v33 = vmul.f32 %v520_v40, %v338_v25 }
 0x166   :  { %v548_v60 = vmul.f32 %v522_v50, %v340_v38  ;;  %1019 = vtanh.f32 %v473_v44  ;;  %v428_v61 = vmul.f32 %v402_v35, %v1363_v7  ;;  %v427_v56 = vmul.f32 %v401_v51, %v1368_v14 }
 0x167   :  { %1021 = vtanh.f32 %v476_v48  ;;  %v475_v19 = vmul.f32 0.7978846, %v449_v55  ;;  %v477_v62 = vmul.f32 0.7978846, %v451_v57  ;;  %v337_v43 = vmul.f32 0.5, %v1274_v12 }
 0x168   :  { %v1010_v1 = vpop.eup %1009  ;;  %v566_v4 = vpack.c.bf16 %v548_v60, %v546_v33  ;;  %1023 = vtanh.f32 %v478_v54  ;;  %v454_v5 = vadd.f32 %v428_v61, %v1363_v7  ;;  %v339_v6 = vmul.f32 0.5, %v1279_v18 }
 0x169   :  { %v1012_v53 = vpop.eup %1011  ;;  %v519_v9 = vadd.f32 1.0, %v1010_v1  ;;  %1025 = vtanh.f32 %v475_v19  ;;  %v453_v15 = vadd.f32 %v427_v56, %v1368_v14  ;;  %v342_v20 = vmul.f32 0.5, %v1302_v52 }
 0x16a   :  { %v1014_v10 = vpop.eup %1013  ;;  %764 = vmatprep.mubr.bf16.mxu1 %v566_v4  ;;  %v521_v49 = vadd.f32 1.0, %v1012_v53  ;;  %1027 = vtanh.f32 %v477_v62  ;;  %v480_v13 = vmul.f32 0.7978846, %v454_v5  ;;  %v344_v59 = vmul.f32 0.5, %v1312_v63 }
 0x16b   :  { %v1016_v17 = vpop.eup %1015  ;;  %v524_v0 = vadd.f32 1.0, %v1014_v10  ;;  %v545_v21 = vmul.f32 %v519_v9, %v337_v43  ;;  %v479_v18 = vmul.f32 0.7978846, %v453_v15  ;;  %v341_v27 = vmul.f32 0.5, %v1307_v58 }
 0x16c   :  { %v547_v46 = vmul.f32 %v521_v49, %v339_v6  ;;  %v526_v12 = vadd.f32 1.0, %v1016_v17  ;;  %1029 = vtanh.f32 %v480_v13  ;;  %v343_v52 = vmul.f32 0.5, %v1315_v2 }
 0x16d   :  { %v550_v16 = vmul.f32 %v524_v0, %v342_v20  ;;  %1031 = vtanh.f32 %v479_v18  ;;  %v346_v30 = vmul.f32 0.5, %v1334_v26  ;;  %v348_v37 = vmul.f32 0.5, %v1345_v36 }
 0x16e   :  { %v565_v47 = vpack.c.bf16 %v547_v46, %v545_v21  ;;  %v552_v23 = vmul.f32 %v526_v12, %v344_v59  ;;  %v345_v11 = vmul.f32 0.5, %v1329_v22  ;;  %v347_v58 = vmul.f32 0.5, %v1338_v28 }
 0x16f   :  { %v1018_v24 = vpop.eup %1017  ;;  %v350_v26 = vmul.f32 0.5, %v1363_v7  ;;  %v349_v28 = vmul.f32 0.5, %v1368_v14  ;;  %v1407_v7 = vld [vmem:[%s1441_s4] ss:$0 sm:$0xff]  ;;  %s1135_s4 = smov [#allocation8]  }
 0x170   :  { %v1020_v45 = vpop.eup %1019  ;;  %765 = vmatmul.mubr.bf16.gmra.mrb[12].mxu1 %v565_v47  ;;  %v568_v25 = vpack.c.bf16 %v552_v23, %v550_v16  ;;  %v523_v3 = vadd.f32 1.0, %v1018_v24  ;;  %s814_s10 = sshll.u32 %s1135_s4, 4  ;;  %s815_s10 = int_to_ptr.vmem [resolvable:$true] %s814_s10 }
 0x171   :  { %v1022_v42 = vpop.eup %1021  ;;  %v525_v63 = vadd.f32 1.0, %v1020_v45  ;;  %s1099_s11 = scalar_lea.vmem %s815_s10, 1664  ;;  %p1104_p11 = scmp.lt.s32.totalorder %s815_s10, %s815_s10 }
 0x172   :  { %v1024_v29 = vpop.eup %1023  ;;  %772 = vmatprep.mubr.bf16.mxu1 %v568_v25  ;;  %v528_v31 = vadd.f32 1.0, %v1022_v42  ;;  %v549_v34 = vmul.f32 %v523_v3, %v341_v27  ;;  %p1100_p10 = scmp.ne.s32.totalorder %s815_s10, %s1099_s11  ;;  %p1105_p12 = scmp.lt.s32.totalorder %s1099_s11, %s1099_s11 }
 0x173   :  { %v1026_v32 = vpop.eup %1025  ;;  %v551_v35 = vmul.f32 %v525_v63, %v343_v52  ;;  %v530_v8 = vadd.f32 1.0, %v1024_v29 }
 0x174   :  { %v1028_v39 = vpop.eup %1027  ;;  %v527_v38 = vadd.f32 1.0, %v1026_v32  ;;  %v554_v40 = vmul.f32 %v528_v31, %v346_v30  ;;  %p1106_p13 = por %p1105_p12, %p1104_p11 }
 0x175   :  { %v567_v2 = vpack.c.bf16 %v551_v35, %v549_v34  ;;  %v556_v41 = vmul.f32 %v530_v8, %v348_v37  ;;  %v529_v44 = vadd.f32 1.0, %v1028_v39 }
 0x176   :  { %v1030_v51 = vpop.eup %1029  ;;  %v553_v48 = vmul.f32 %v527_v38, %v345_v11  ;;  %p1107_p0 = pnand %p1106_p13, %p1100_p10 }
 0x177   :  { %v570_v50 = vpack.c.bf16 %v556_v41, %v554_v40  ;;  %v555_v54 = vmul.f32 %v529_v44, %v347_v58  ;;  %v532_v55 = vadd.f32 1.0, %v1030_v51  ;;  %v1032_v33 = vpop.eup %1031 }
 0x178   :  { %773 = vmatmul.mubr.bf16.gmra.mrb[16].mxu1 %v567_v2  ;;  %v531_v60 = vadd.f32 1.0, %v1032_v33 }
 0x179   :  { %780 = vmatprep.mubr.bf16.mxu1 %v570_v50  ;;  %v569_v36 = vpack.c.bf16 %v555_v54, %v553_v48  ;;  %v558_v57 = vmul.f32 %v532_v55, %v350_v26 }
 0x17a   :  { %v557_v61 = vmul.f32 %v531_v60, %v349_v28 }
 0x17b   :  { %v572_v22 = vpack.c.bf16 %v558_v57, %v558_v57 }
 0x17c   :  { %v571_v19 = vpack.c.bf16 %v557_v61, %v557_v61 }
 0x180   :  { %781 = vmatmul.mubr.bf16.gmra.mrb[20].mxu1 %v569_v36 }
 0x181   :  { %788 = vmatprep.mubr.bf16.mxu1 %v572_v22 }
 0x188   :  { %789 = vmatmul.mubr.bf16.gmra.mrb[24].mxu1 %v571_v19 }
 0x220   :  { %v883_v62 = vpop.f32.mrb[0].mxu1 }
 0x221   :  { %v884_v1 = vpop.f32.mrb[1].mxu1 }
 0x222   :  { %v885_v4 = vadd.f32 %v884_v1, %v883_v62  ;;  %v886_v5 = vpop.f32.mrb[2].mxu1 }
 0x223   :  { %v887_v56 = vpop.f32.mrb[3].mxu1 }
 0x224   :  { %v743_v53 = vadd.f32 %v885_v4, %v1407_v7  ;;  %v888_v43 = vadd.f32 %v887_v56, %v886_v5 }
 0x226   :  { %796 = vst [vmem:[#allocation8] sm:$0xff] %v743_v53  ;;  %v746_v14 = vadd.f32 %v888_v43, %v1407_v7 }
 0x228   :  { %797 = vst [vmem:[#allocation8 + $0x8] sm:$0xff] %v746_v14  ;;  %v889_v6 = vpop.f32.mrb[4].mxu1 }
 0x229   :  { %v890_v9 = vpop.f32.mrb[5].mxu1 }
 0x22a   :  { %v891_v10 = vadd.f32 %v890_v9, %v889_v6  ;;  %v892_v49 = vpop.f32.mrb[6].mxu1 }
 0x22b   :  { %v893_v13 = vpop.f32.mrb[7].mxu1 }
 0x22c   :  { %v751_v15 = vadd.f32 %v891_v10, %v1407_v7  ;;  %v894_v17 = vadd.f32 %v893_v13, %v892_v49 }
 0x22e   :  { %798 = vst [vmem:[#allocation8 + $0x10] sm:$0xff] %v751_v15  ;;  %v754_v20 = vadd.f32 %v894_v17, %v1407_v7 }
 0x230   :  { %799 = vst [vmem:[#allocation8 + $0x18] sm:$0xff] %v754_v20 }
 0x237   :  { %v895_v59 = vpop.f32.mrb[8].mxu1 }
 0x238   :  { %v896_v0 = vpop.f32.mrb[9].mxu1 }
 0x239   :  { %v897_v21 = vadd.f32 %v896_v0, %v895_v59  ;;  %v898_v46 = vpop.f32.mrb[10].mxu1 }
 0x23a   :  { %v899_v12 = vpop.f32.mrb[11].mxu1 }
 0x23b   :  { %v759_v18 = vadd.f32 %v897_v21, %v1407_v7  ;;  %v900_v47 = vadd.f32 %v899_v12, %v898_v46 }
 0x23d   :  { %800 = vst [vmem:[#allocation8 + $0x20] sm:$0xff] %v759_v18  ;;  %v762_v16 = vadd.f32 %v900_v47, %v1407_v7 }
 0x23f   :  { %801 = vst [vmem:[#allocation8 + $0x28] sm:$0xff] %v762_v16 }
 0x243   :  { %v901_v23 = vpop.f32.mrb[12].mxu1 }
 0x244   :  { %v902_v24 = vpop.f32.mrb[13].mxu1 }
 0x245   :  { %v903_v45 = vadd.f32 %v902_v24, %v901_v23  ;;  %v904_v25 = vpop.f32.mrb[14].mxu1 }
 0x246   :  { %v905_v3 = vpop.f32.mrb[15].mxu1 }
 0x247   :  { %v767_v42 = vadd.f32 %v903_v45, %v1407_v7  ;;  %v906_v27 = vadd.f32 %v905_v3, %v904_v25 }
 0x249   :  { %802 = vst [vmem:[#allocation8 + $0x30] sm:$0xff] %v767_v42  ;;  %v770_v52 = vadd.f32 %v906_v27, %v1407_v7 }
 0x24b   :  { %803 = vst [vmem:[#allocation8 + $0x38] sm:$0xff] %v770_v52  ;;  %v907_v63 = vpop.f32.mrb[16].mxu1 }
 0x24c   :  { %v908_v29 = vpop.f32.mrb[17].mxu1 }
 0x24d   :  { %v909_v30 = vadd.f32 %v908_v29, %v907_v63  ;;  %v910_v31 = vpop.f32.mrb[18].mxu1 }
 0x24e   :  { %v911_v32 = vpop.f32.mrb[19].mxu1 }
 0x24f   :  { %v775_v34 = vadd.f32 %v909_v30, %v1407_v7  ;;  %v912_v35 = vadd.f32 %v911_v32, %v910_v31 }
 0x251   :  { %804 = vst [vmem:[#allocation8 + $0x40] sm:$0xff] %v775_v34  ;;  %v778_v37 = vadd.f32 %v912_v35, %v1407_v7 }
 0x253   :  { %805 = vst [vmem:[#allocation8 + $0x48] sm:$0xff] %v778_v37  ;;  %v913_v8 = vpop.f32.mrb[20].mxu1 }
 0x254   :  { %v914_v39 = vpop.f32.mrb[21].mxu1 }
 0x255   :  { %v915_v11 = vadd.f32 %v914_v39, %v913_v8  ;;  %v916_v58 = vpop.f32.mrb[22].mxu1 }
 0x256   :  { %v917_v38 = vpop.f32.mrb[23].mxu1 }
 0x257   :  { %v783_v2 = vadd.f32 %v915_v11, %v1407_v7  ;;  %v918_v40 = vadd.f32 %v917_v38, %v916_v58 }
 0x259   :  { %806 = vst [vmem:[#allocation8 + $0x50] sm:$0xff] %v783_v2  ;;  %v786_v41 = vadd.f32 %v918_v40, %v1407_v7 }
 0x25b   :  { %807 = vst [vmem:[#allocation8 + $0x58] sm:$0xff] %v786_v41  ;;  %v919_v44 = vpop.f32.mrb[24].mxu1 }
 0x25c   :  { %v920_v51 = vpop.f32.mrb[25].mxu1 }
 0x25d   :  { %v921_v26 = vadd.f32 %v920_v51, %v919_v44  ;;  %v922_v50 = vpop.f32.mrb[26].mxu1 }
 0x25e   :  { %v923_v48 = vpop.f32.mrb[27].mxu1 }
 0x25f   :  { %v791_v54 = vadd.f32 %v921_v26, %v1407_v7 }
 0x261   :  { %808 = vst [vmem:[#allocation8 + $0x60] sm:$0xf] %v791_v54 }
 0x262   :  { %1110 = shalt.err (!%p1107_p0)
}
 0x263   :  { %s1111_s14 = scalar_lea.hbm %s1442_s5, 1664 }
 0x264   :  { %p1112_p1 = scmp.ne.s32.totalorder %s1442_s5, %s1111_s14  ;;  %p1115_p2 = scmp.lt.u32.totalorder %s1111_s14, %s1442_s5 }
 0x266   :  { %p1117_p3 = pnand %p1115_p2, %p1112_p1 }
 0x268   :  { %1120 = shalt.err (!%p1117_p3)
}
 0x269   :  { %820 = dma.vmem_to_hbm [thread:$0]  %s815_s10, 1664, %s1442_s5, [#allocation4], %s1128_s28, %s1128_s28, %s1129_s29  }
 0x26a   :  { %1125 = dma.done.wait [#allocation4], 1664  }
 0x26b   :  { %1126 = vsyncadd [#allocation4], 4294965632 }
 0x26c   :  { %824 = vsyncpa [#allocation3], 1 }
 0x26d   :  { %825 = vsyncpa [#allocation6], 1 }
 0x26e   :  { %826 = vsyncpa [#allocation4], 1 }

// kernel: tpu_custom_call.1
= control target key start
LH: loop header
LB: loop body
LE: loop exit
PB: predicated region body
PF: predicated region fallthrough
CT: control target
= control target key end

     0   :  { %10 = vsyncpa [#allocation3], 0  ;;  %s1437_s0 = inlined_call_operand.hbm [shape: bf16[100,128], index: 0, kind: input, shape index: {}]   ;;  %s1438_s1 = inlined_call_operand.hbm [shape: bf16[128,256], index: 1, kind: input, shape index: {}]   ;;  %s1439_s2 = inlined_call_operand.vmem [shape: f32[1,256], index: 2, kind: input, shape index: {}]   ;;  %s1440_s3 = inlined_call_operand.hbm [shape: bf16[256,128], index: 3, kind: input, shape index: {}]   ;;  %s1441_s4 = inlined_call_operand.vmem [shape: f32[1,128], index: 4, kind: input, shape index: {}]   ;;  %s1442_s5 = inlined_call_operand.hbm [shape: f32[100,128], index: 5, kind: output, shape index: {}]  }
   0x1   :  { %11 = vsyncpa [#allocation6], 0 }
   0x2   :  { %12 = vsyncpa [#allocation4], 0  ;;  %s1127_s18 = smov [#allocation5]   ;;  %s1033_s22 = scalar_lea.hbm %s1438_s1, 2048 }
   0x3   :  { %s30_s19 = sshll.u32 %s1127_s18, 4  ;;  %p1034_p0 = scmp.ne.s32.totalorder %s1438_s1, %s1033_s22  ;;  %s31_s19 = int_to_ptr.vmem [resolvable:$true] %s30_s19 }
   0x4   :  { %p1037_p1 = scmp.lt.u32.totalorder %s1033_s22, %s1438_s1 }
   0x6   :  { %p1039_p2 = pnand %p1037_p1, %p1034_p0 }
   0x8   :  { %1042 = shalt.err (!%p1039_p2)
}
   0x9   :  { %s1043_s27 = scalar_lea.vmem %s31_s19, 2048  ;;  %p1048_p4 = scmp.lt.s32.totalorder %s31_s19, %s31_s19 }
   0xa   :  { %p1044_p3 = scmp.ne.s32.totalorder %s31_s19, %s1043_s27  ;;  %p1049_p5 = scmp.lt.s32.totalorder %s1043_s27, %s1043_s27 }
   0xc   :  { %p1050_p6 = por %p1049_p5, %p1048_p4 }
   0xe   :  { %p1051_p7 = pnand %p1050_p6, %p1044_p3 }
  0x10   :  { %1054 = shalt.err (!%p1051_p7)
}
  0x11   :  { %s1128_s28 = smov 128   ;;  %s1129_s29 = smov 8  }
  0x12   :  { %36 = dma.hbm_to_vmem [thread:$0]  %s1438_s1, 2048, %s31_s19, [#allocation6], %s1128_s28, %s1128_s28, %s1129_s29  }
  0x13   :  { %s1130_s7 = smov [#allocation2]   ;;  %s1055_s11 = scalar_lea.hbm %s1437_s0, 832 }
  0x14   :  { %s18_s8 = sshll.u32 %s1130_s7, 4  ;;  %p1056_p8 = scmp.ne.s32.totalorder %s1437_s0, %s1055_s11  ;;  %s19_s8 = int_to_ptr.vmem [resolvable:$true] %s18_s8 }
  0x15   :  { %p1059_p9 = scmp.lt.u32.totalorder %s1055_s11, %s1437_s0 }
  0x17   :  { %p1061_p10 = pnand %p1059_p9, %p1056_p8 }
  0x19   :  { %1064 = shalt.err (!%p1061_p10)
}
  0x1a   :  { %s1065_s16 = scalar_lea.vmem %s19_s8, 832  ;;  %p1070_p12 = scmp.lt.s32.totalorder %s19_s8, %s19_s8 }
  0x1b   :  { %p1066_p11 = scmp.ne.s32.totalorder %s19_s8, %s1065_s16  ;;  %p1071_p13 = scmp.lt.s32.totalorder %s1065_s16, %s1065_s16 }
  0x1d   :  { %p1072_p0 = por %p1071_p13, %p1070_p12 }
  0x1f   :  { %p1073_p1 = pnand %p1072_p0, %p1066_p11 }
  0x21   :  { %1076 = shalt.err (!%p1073_p1)
}
  0x22   :  { %s1131_s1 = smov 64   ;;  %s1132_s17 = smov 4  }
  0x23   :  { %24 = dma.hbm_to_vmem [thread:$0]  %s1437_s0, 832, %s19_s8, [#allocation3], %s1131_s1, %s1131_s1, %s1132_s17  }
  0x24   :  { %s1133_s20 = smov [#allocation7]   ;;  %s1077_s24 = scalar_lea.hbm %s1440_s3, 2048 }
  0x25   :  { %s44_s21 = sshll.u32 %s1133_s20, 4  ;;  %p1078_p2 = scmp.ne.s32.totalorder %s1440_s3, %s1077_s24  ;;  %s45_s21 = int_to_ptr.vmem [resolvable:$true] %s44_s21 }
  0x26   :  { %p1081_p3 = scmp.lt.u32.totalorder %s1077_s24, %s1440_s3 }
  0x28   :  { %p1083_p4 = pnand %p1081_p3, %p1078_p2 }
  0x2a   :  { %1086 = shalt.err (!%p1083_p4)
}
  0x2b   :  { %s1087_s6 = scalar_lea.vmem %s45_s21, 2048  ;;  %p1092_p6 = scmp.lt.s32.totalorder %s45_s21, %s45_s21 }
  0x2c   :  { %p1088_p5 = scmp.ne.s32.totalorder %s45_s21, %s1087_s6  ;;  %p1093_p7 = scmp.lt.s32.totalorder %s1087_s6, %s1087_s6 }
  0x2e   :  { %p1094_p8 = por %p1093_p7, %p1092_p6 }
  0x30   :  { %p1095_p9 = pnand %p1094_p8, %p1088_p5 }
  0x32   :  { %1098 = shalt.err (!%p1095_p9)
}
  0x33   :  { %50 = dma.hbm_to_vmem [thread:$0]  %s1440_s3, 2048, %s45_s21, [#allocation6], %s1131_s1, %s1131_s1, %s1132_s17  }
  0x34   :  { %1121 = dma.done.wait [#allocation3], 832  }
  0x35   :  { %1122 = vsyncadd [#allocation3], 4294966464 }
  0x36   :  { %1123 = dma.done.wait [#allocation6], 4096  }
  0x37   :  { %1124 = vsyncadd [#allocation6], 4294963200  ;;  %v1134_v0 = vmov 0   ;;  %v934_v1 = vld [vmem:[#allocation5 + $0x4] ss:$8 sps:$4 sm:$0xff]   ;;  %v959_v18 = vld [vmem:[#allocation2 + $0x8] sm:$0xff]   ;;  %v94_v40 = vlaneseq }
  0x38   :  { %256 = vmatprep.mubr.bf16.mxu0 %v1134_v0  ;;  %v936_v2 = vld [vmem:[#allocation5] ss:$8 sps:$4 sm:$0xff]   ;;  %224 = vmatprep.subr.bf16.mxu0 %v934_v1  ;;  %v937_v3 = vld [vmem:[#allocation5 + $0x14] ss:$8 sps:$4 sm:$0xff]   ;;  %v939_v4 = vld [vmem:[#allocation5 + $0x10] ss:$8 sps:$4 sm:$0xff]  }
  0x39   :  { %225 = vmatpush1.bf16.msra.mxu0 %v936_v2  ;;  %v940_v5 = vld [vmem:[#allocation5 + $0x24] ss:$8 sps:$4 sm:$0xff]   ;;  %v942_v6 = vld [vmem:[#allocation5 + $0x20] ss:$8 sps:$4 sm:$0xff]   ;;  %v943_v7 = vld [vmem:[#allocation5 + $0x34] ss:$8 sps:$4 sm:$0xff]  }
  0x3a   :  { %226 = vmatprep.subr.bf16.mxu0 %v937_v3  ;;  %v945_v8 = vld [vmem:[#allocation5 + $0x30] ss:$8 sps:$4 sm:$0xff]   ;;  %v946_v9 = vld [vmem:[#allocation5 + $0x44] ss:$8 sps:$4 sm:$0xff]   ;;  %v948_v10 = vld [vmem:[#allocation5 + $0x40] ss:$8 sps:$4 sm:$0xff]  }
  0x3b   :  { %v949_v11 = vld [vmem:[#allocation5 + $0x54] ss:$8 sps:$4 sm:$0xff]   ;;  %v951_v12 = vld [vmem:[#allocation5 + $0x50] ss:$8 sps:$4 sm:$0xff]   ;;  %v952_v13 = vld [vmem:[#allocation5 + $0x64] ss:$8 sps:$4 sm:$0xff]  }
  0x3c   :  { %v954_v14 = vld [vmem:[#allocation5 + $0x60] ss:$8 sps:$4 sm:$0xff]   ;;  %v955_v15 = vld [vmem:[#allocation5 + $0x74] ss:$8 sps:$4 sm:$0xff]   ;;  %v957_v16 = vld [vmem:[#allocation5 + $0x70] ss:$8 sps:$4 sm:$0xff]  }
  0x3d   :  { %227 = vmatpush1.bf16.msra.mxu0 %v939_v4  ;;  %v958_v17 = vld [vmem:[#allocation2] sm:$0xff]   ;;  %v960_v19 = vld [vmem:[#allocation2 + $0x10] sm:$0xff]   ;;  %v961_v20 = vld [vmem:[#allocation2 + $0x18] sm:$0xff]   ;;  %v95_v41 = vshrl.u32 %v94_v40, 7 }
  0x3e   :  { %228 = vmatprep.subr.bf16.mxu0 %v940_v5  ;;  %v962_v21 = vld [vmem:[#allocation2 + $0x20] sm:$0xff]   ;;  %v963_v22 = vld [vmem:[#allocation2 + $0x28] sm:$0xff]   ;;  %v964_v23 = vld [vmem:[#allocation2 + $0x30] ss:$0 sps:$4 sm:$0x33]  }
  0x3f   :  { %v965_v24 = vld [vmem:[#allocation7 + $0x40] sm:$0xff]   ;;  %v967_v26 = vld [vmem:[#allocation7 + $0x48] sm:$0xff]   ;;  %v969_v28 = vld [vmem:[#allocation7 + $0x50] sm:$0xff]   ;;  %v96_v42 = vsub.s32 0, %v95_v41  ;;  %v100_v44 = vsub.s32 1, %v95_v41 }
  0x40   :  { %v966_v25 = vld [vmem:[#allocation7] sm:$0xff]   ;;  %867 = vmatprep.subr.bf16.mxu1 %v965_v24  ;;  %v968_v27 = vld [vmem:[#allocation7 + $0x8] sm:$0xff]   ;;  %v970_v29 = vld [vmem:[#allocation7 + $0x10] sm:$0xff]  }
  0x41   :  { %229 = vmatpush1.bf16.msra.mxu0 %v942_v6  ;;  %868 = vmatpush3.bf16.msra.mxu1 %v966_v25  ;;  %v971_v30 = vld [vmem:[#allocation7 + $0x58] sm:$0xff]   ;;  %v973_v32 = vld [vmem:[#allocation7 + $0x60] sm:$0xff]   ;;  %v975_v34 = vld [vmem:[#allocation7 + $0x68] sm:$0xff]  }
  0x42   :  { %230 = vmatprep.subr.bf16.mxu0 %v943_v7  ;;  %869 = vmatprep.subr.bf16.mxu1 %v967_v26  ;;  %v972_v31 = vld [vmem:[#allocation7 + $0x18] sm:$0xff]   ;;  %v974_v33 = vld [vmem:[#allocation7 + $0x20] sm:$0xff]   ;;  %v976_v35 = vld [vmem:[#allocation7 + $0x28] sm:$0xff]  }
  0x43   :  { %v977_v36 = vld [vmem:[#allocation7 + $0x70] sm:$0xff]   ;;  %v979_v38 = vld [vmem:[#allocation7 + $0x78] sm:$0xff]   ;;  %v92_v43 = vld [vmem:[%s1439_s2] sm:$0x3] }
  0x44   :  { %v978_v37 = vld [vmem:[#allocation7 + $0x30] sm:$0xff]   ;;  %v980_v39 = vld [vmem:[#allocation7 + $0x38] sm:$0xff]   ;;  %v1208_v45 = vrot.slane %v92_v43, %v96_v42  ;;  %v1210_v46 = vrot.slane %v92_v43, %v100_v44 }
  0x45   :  { %231 = vmatpush1.bf16.msra.mxu0 %v945_v8  ;;  %870 = vmatpush3.bf16.msra.mxu1 %v968_v27 }
  0x46   :  { %232 = vmatprep.subr.bf16.mxu0 %v946_v9  ;;  %871 = vmatprep.subr.bf16.mxu1 %v969_v28 }
  0x49   :  { %233 = vmatpush1.bf16.msra.mxu0 %v948_v10  ;;  %872 = vmatpush3.bf16.msra.mxu1 %v970_v29 }
  0x4a   :  { %234 = vmatprep.subr.bf16.mxu0 %v949_v11  ;;  %873 = vmatprep.subr.bf16.mxu1 %v971_v30 }
  0x4d   :  { %235 = vmatpush1.bf16.msra.mxu0 %v951_v12  ;;  %874 = vmatpush3.bf16.msra.mxu1 %v972_v31 }
  0x4e   :  { %236 = vmatprep.subr.bf16.mxu0 %v952_v13  ;;  %875 = vmatprep.subr.bf16.mxu1 %v973_v32 }
  0x51   :  { %237 = vmatpush1.bf16.msra.mxu0 %v954_v14  ;;  %876 = vmatpush3.bf16.msra.mxu1 %v974_v33 }
  0x52   :  { %238 = vmatprep.subr.bf16.mxu0 %v955_v15  ;;  %877 = vmatprep.subr.bf16.mxu1 %v975_v34 }
  0x55   :  { %239 = vmatpush1.bf16.msra.mxu0 %v957_v16  ;;  %878 = vmatpush3.bf16.msra.mxu1 %v976_v35 }
  0x56   :  { %879 = vmatprep.subr.bf16.mxu1 %v977_v36 }
  0x58   :  { %257 = vmatmul.mubr.bf16.vlgmr.msra.gmra.mrb[0].mxu0 %v958_v17 }
  0x59   :  { %266 = vmatprep.mubr.bf16.mxu0 %v1134_v0  ;;  %880 = vmatpush3.bf16.msra.mxu1 %v978_v37 }
  0x5a   :  { %881 = vmatprep.subr.bf16.mxu1 %v979_v38 }
  0x5d   :  { %882 = vmatpush3.bf16.msra.mxu1 %v980_v39 }
  0x60   :  { %267 = vmatmul.mubr.bf16.gmra.mrb[4].mxu0 %v959_v18 }
  0x61   :  { %276 = vmatprep.mubr.bf16.mxu0 %v1134_v0 }
  0x68   :  { %277 = vmatmul.mubr.bf16.gmra.mrb[8].mxu0 %v960_v19 }
  0x69   :  { %286 = vmatprep.mubr.bf16.mxu0 %v1134_v0 }
  0x70   :  { %287 = vmatmul.mubr.bf16.gmra.mrb[12].mxu0 %v961_v20 }
  0x71   :  { %296 = vmatprep.mubr.bf16.mxu0 %v1134_v0 }
  0x78   :  { %297 = vmatmul.mubr.bf16.gmra.mrb[16].mxu0 %v962_v21 }
  0x79   :  { %306 = vmatprep.mubr.bf16.mxu0 %v1134_v0 }
  0x80   :  { %307 = vmatmul.mubr.bf16.gmra.mrb[20].mxu0 %v963_v22 }
  0x81   :  { %316 = vmatprep.mubr.bf16.mxu0 %v1134_v0 }
  0x88   :  { %317 = vmatmul.mubr.bf16.gmra.mrb[24].mxu0 %v964_v23 }
 0x12b   :  { %v258_v47 = vpop.f32.mrb[0].mxu0 }
 0x12c   :  { %v259_v48 = vadd.f32 %v258_v47, %v1208_v45  ;;  %v260_v49 = vpop.f32.mrb[1].mxu0 }
 0x12d   :  { %v261_v50 = vadd.f32 %v260_v49, %v1210_v46  ;;  %v262_v51 = vpop.f32.mrb[2].mxu0 }
 0x12e   :  { %v351_v52 = vmul.f32 0.044715, %v259_v48  ;;  %v1215_v53 = vadd.f32 %v262_v51, %v1208_v45  ;;  %v264_v54 = vpop.f32.mrb[3].mxu0  ;;  %v325_v39 = vmul.f32 0.5, %v259_v48 }
 0x12f   :  { %v352_v55 = vmul.f32 0.044715, %v261_v50  ;;  %v1218_v56 = vadd.f32 %v264_v54, %v1210_v46  ;;  %v326_v38 = vmul.f32 0.5, %v261_v50 }
 0x130   :  { %v377_v57 = vmul.f32 %v351_v52, %v259_v48  ;;  %v353_v58 = vmul.f32 0.044715, %v1215_v53 }
 0x131   :  { %v354_v59 = vmul.f32 0.044715, %v1218_v56  ;;  %v378_v60 = vmul.f32 %v352_v55, %v261_v50 }
 0x132   :  { %v403_v61 = vmul.f32 %v377_v57, %v259_v48  ;;  %v379_v62 = vmul.f32 %v353_v58, %v1215_v53  ;;  %v328_v57 = vmul.f32 0.5, %v1218_v56  ;;  %v327_v58 = vmul.f32 0.5, %v1215_v53 }
 0x133   :  { %v268_v63 = vpop.f32.mrb[4].mxu0  ;;  %v380_v0 = vmul.f32 %v354_v59, %v1218_v56  ;;  %v404_v1 = vmul.f32 %v378_v60, %v261_v50 }
 0x134   :  { %v405_v2 = vmul.f32 %v379_v62, %v1215_v53  ;;  %v1226_v3 = vadd.f32 %v268_v63, %v1208_v45  ;;  %v270_v4 = vpop.f32.mrb[5].mxu0  ;;  %v429_v5 = vadd.f32 %v403_v61, %v259_v48 }
 0x135   :  { %v271_v6 = vadd.f32 %v270_v4, %v1210_v46  ;;  %v272_v7 = vpop.f32.mrb[6].mxu0  ;;  %v406_v8 = vmul.f32 %v380_v0, %v1218_v56  ;;  %v430_v9 = vadd.f32 %v404_v1, %v261_v50 }
 0x136   :  { %v355_v10 = vmul.f32 0.044715, %v1226_v3  ;;  %v1232_v11 = vadd.f32 %v272_v7, %v1208_v45  ;;  %v274_v12 = vpop.f32.mrb[7].mxu0  ;;  %v431_v13 = vadd.f32 %v405_v2, %v1215_v53  ;;  %v455_v14 = vmul.f32 0.7978846, %v429_v5 }
 0x137   :  { %v356_v15 = vmul.f32 0.044715, %v271_v6  ;;  %v275_v16 = vadd.f32 %v274_v12, %v1210_v46  ;;  %v432_v17 = vadd.f32 %v406_v8, %v1218_v56  ;;  %v456_v18 = vmul.f32 0.7978846, %v430_v9 }
 0x138   :  { %v381_v19 = vmul.f32 %v355_v10, %v1226_v3  ;;  %v357_v20 = vmul.f32 0.044715, %v1232_v11  ;;  %v457_v21 = vmul.f32 0.7978846, %v431_v13  ;;  %981 = vtanh.f32 %v455_v14 }
 0x139   :  { %v382_v22 = vmul.f32 %v356_v15, %v271_v6  ;;  %v358_v23 = vmul.f32 0.044715, %v275_v16  ;;  %v458_v24 = vmul.f32 0.7978846, %v432_v17  ;;  %983 = vtanh.f32 %v456_v18 }
 0x13a   :  { %v407_v25 = vmul.f32 %v381_v19, %v1226_v3  ;;  %v383_v26 = vmul.f32 %v357_v20, %v1232_v11  ;;  %985 = vtanh.f32 %v457_v21  ;;  %v1261_v59 = vmul.f32 0.5, %v271_v6 }
 0x13b   :  { %v408_v27 = vmul.f32 %v382_v22, %v271_v6  ;;  %v384_v28 = vmul.f32 %v358_v23, %v275_v16  ;;  %v278_v29 = vpop.f32.mrb[8].mxu0  ;;  %987 = vtanh.f32 %v458_v24  ;;  %v1264_v0 = vmul.f32 0.5, %v275_v16 }
 0x13c   :  { %v409_v30 = vmul.f32 %v383_v26, %v1232_v11  ;;  %v280_v31 = vpop.f32.mrb[9].mxu0  ;;  %v433_v36 = vadd.f32 %v407_v25, %v1226_v3  ;;  %v1252_v47 = vadd.f32 %v278_v29, %v1208_v45 }
 0x13d   :  { %v410_v32 = vmul.f32 %v384_v28, %v275_v16  ;;  %v1243_v33 = vadd.f32 %v280_v31, %v1210_v46  ;;  %v282_v34 = vpop.f32.mrb[10].mxu0  ;;  %v434_v35 = vadd.f32 %v408_v27, %v271_v6 }
 0x13e   :  { %v284_v37 = vpop.f32.mrb[11].mxu0  ;;  %v435_v40 = vadd.f32 %v409_v30, %v1232_v11  ;;  %v1255_v49 = vadd.f32 %v282_v34, %v1208_v45  ;;  %v459_v51 = vmul.f32 0.7978846, %v433_v36  ;;  %v359_v2 = vmul.f32 0.044715, %v1252_v47 }
 0x13f   :  { %v360_v41 = vmul.f32 0.044715, %v1243_v33  ;;  %v1249_v42 = vadd.f32 %v284_v37, %v1210_v46  ;;  %v436_v43 = vadd.f32 %v410_v32, %v275_v16  ;;  %v460_v44 = vmul.f32 0.7978846, %v434_v35 }
 0x140   :  { %v461_v52 = vmul.f32 0.7978846, %v435_v40  ;;  %v361_v6 = vmul.f32 0.044715, %v1255_v49  ;;  %v329_v16 = vmul.f32 0.5, %v1226_v3  ;;  %v385_v21 = vmul.f32 %v359_v2, %v1252_v47 }
 0x141   :  { %v386_v50 = vmul.f32 %v360_v41, %v1243_v33  ;;  %v362_v48 = vmul.f32 0.044715, %v1249_v42  ;;  %v462_v54 = vmul.f32 0.7978846, %v436_v43  ;;  %989 = vtanh.f32 %v460_v44 }
 0x142   :  { %v982_v55 = vpop.eup %981  ;;  %991 = vtanh.f32 %v459_v51  ;;  %v387_v25 = vmul.f32 %v361_v6, %v1255_v49  ;;  %v331_v3 = vmul.f32 0.5, %v1232_v11  ;;  %v411_v11 = vmul.f32 %v385_v21, %v1252_v47 }
 0x143   :  { %v984_v60 = vpop.eup %983  ;;  %v388_v61 = vmul.f32 %v362_v48, %v1249_v42  ;;  %v288_v62 = vpop.f32.mrb[12].mxu0  ;;  %v507_v63 = vadd.f32 1.0, %v982_v55  ;;  %993 = vtanh.f32 %v462_v54  ;;  %v412_v4 = vmul.f32 %v386_v50, %v1243_v33 }
 0x144   :  { %v986_v1 = vpop.eup %985  ;;  %v290_v5 = vpop.f32.mrb[13].mxu0  ;;  %v508_v56 = vadd.f32 1.0, %v984_v60  ;;  %995 = vtanh.f32 %v461_v52  ;;  %v1274_v12 = vadd.f32 %v288_v62, %v1208_v45  ;;  %v1298_v43 = vmul.f32 0.5, %v1243_v33 }
 0x145   :  { %v988_v53 = vpop.eup %987  ;;  %v414_v7 = vmul.f32 %v388_v61, %v1249_v42  ;;  %v1271_v8 = vadd.f32 %v290_v5, %v1210_v46  ;;  %v292_v9 = vpop.f32.mrb[14].mxu0  ;;  %v509_v10 = vadd.f32 1.0, %v986_v1  ;;  %v533_v15 = vmul.f32 %v507_v63, %v325_v39 }
 0x146   :  { %v294_v13 = vpop.f32.mrb[15].mxu0  ;;  %v510_v14 = vadd.f32 1.0, %v988_v53  ;;  %v1279_v18 = vadd.f32 %v292_v9, %v1208_v45  ;;  %v534_v22 = vmul.f32 %v508_v56, %v326_v38  ;;  %v438_v24 = vadd.f32 %v412_v4, %v1243_v33 }
 0x147   :  { %v364_v17 = vmul.f32 0.044715, %v1271_v8  ;;  %v1282_v19 = vadd.f32 %v294_v13, %v1210_v46  ;;  %v535_v20 = vmul.f32 %v509_v10, %v327_v58  ;;  %v440_v27 = vadd.f32 %v414_v7, %v1249_v42 }
 0x148   :  { %v536_v23 = vmul.f32 %v510_v14, %v328_v57  ;;  %v363_v28 = vmul.f32 0.044715, %v1274_v12  ;;  %v464_v31 = vmul.f32 0.7978846, %v438_v24  ;;  %v365_v35 = vmul.f32 0.044715, %v1279_v18 }
 0x149   :  { %v559_v26 = vpack.c.bf16 %v535_v20, %v533_v15  ;;  %v366_v29 = vmul.f32 0.044715, %v1282_v19  ;;  %v390_v34 = vmul.f32 %v364_v17, %v1271_v8  ;;  %v466_v37 = vmul.f32 0.7978846, %v440_v27 }
 0x14a   :  { %v560_v30 = vpack.c.bf16 %v536_v23, %v534_v22  ;;  %v1294_v38 = vmul.f32 0.5, %v1252_v47  ;;  %997 = vtanh.f32 %v464_v31  ;;  %v413_v51 = vmul.f32 %v387_v25, %v1255_v49 }
 0x14b   :  { %v990_v32 = vpop.eup %989  ;;  %v298_v36 = vpop.f32.mrb[16].mxu0  ;;  %999 = vtanh.f32 %v466_v37  ;;  %v389_v55 = vmul.f32 %v363_v28, %v1274_v12  ;;  %v392_v57 = vmul.f32 %v366_v29, %v1282_v19  ;;  %v416_v61 = vmul.f32 %v390_v34, %v1271_v8 }
 0x14c   :  { %v992_v39 = vpop.eup %991  ;;  %v300_v40 = vpop.f32.mrb[17].mxu0  ;;  %740 = vmatprep.mubr.bf16.mxu1 %v560_v30  ;;  %v512_v41 = vadd.f32 1.0, %v990_v32  ;;  %v1307_v58 = vadd.f32 %v298_v36, %v1208_v45  ;;  %v391_v62 = vmul.f32 %v365_v35, %v1279_v18  ;;  %v437_v56 = vadd.f32 %v411_v11, %v1252_v47 }
 0x14d   :  { %v994_v44 = vpop.eup %993  ;;  %v1302_v52 = vadd.f32 %v300_v40, %v1210_v46  ;;  %v302_v50 = vpop.f32.mrb[18].mxu0  ;;  %741 = vmatmul.mubr.bf16.vlgmr.msra.gmra.mrb[0].mxu1 %v559_v26  ;;  %v511_v48 = vadd.f32 1.0, %v992_v39  ;;  %v439_v9 = vadd.f32 %v413_v51, %v1255_v49  ;;  %v418_v10 = vmul.f32 %v392_v57, %v1282_v19 }
 0x14e   :  { %v996_v54 = vpop.eup %995  ;;  %v304_v33 = vpop.f32.mrb[19].mxu0  ;;  %v514_v60 = vadd.f32 1.0, %v994_v44  ;;  %v1315_v2 = vadd.f32 %v302_v50, %v1208_v45  ;;  %v538_v4 = vmul.f32 %v512_v41, %v1261_v59  ;;  %v367_v13 = vmul.f32 0.044715, %v1307_v58 }
 0x14f   :  { %v1312_v63 = vadd.f32 %v304_v33, %v1210_v46  ;;  %v513_v1 = vadd.f32 1.0, %v996_v54  ;;  %v368_v53 = vmul.f32 0.044715, %v1302_v52  ;;  %v537_v6 = vmul.f32 %v511_v48, %v329_v16 }
 0x150   :  { %v540_v5 = vmul.f32 %v514_v60, %v1264_v0  ;;  %v463_v15 = vmul.f32 0.7978846, %v437_v56  ;;  %v336_v0 = vmul.f32 0.5, %v1249_v42  ;;  %v465_v21 = vmul.f32 0.7978846, %v439_v9 }
 0x151   :  { %v539_v7 = vmul.f32 %v513_v1, %v331_v3  ;;  %v370_v17 = vmul.f32 0.044715, %v1312_v63  ;;  %v415_v47 = vmul.f32 %v389_v55, %v1274_v12  ;;  %v369_v16 = vmul.f32 0.044715, %v1315_v2 }
 0x152   :  { %v562_v14 = vpack.c.bf16 %v540_v5, %v538_v4  ;;  %1001 = vtanh.f32 %v463_v15  ;;  %v417_v24 = vmul.f32 %v391_v62, %v1279_v18  ;;  %v394_v25 = vmul.f32 %v368_v53, %v1302_v52 }
 0x153   :  { %v308_v20 = vpop.f32.mrb[20].mxu0  ;;  %v561_v59 = vpack.c.bf16 %v539_v7, %v537_v6  ;;  %1003 = vtanh.f32 %v465_v21  ;;  %v393_v27 = vmul.f32 %v367_v13, %v1307_v58  ;;  %v442_v30 = vadd.f32 %v416_v61, %v1271_v8 }
 0x154   :  { %v1329_v22 = vadd.f32 %v308_v20, %v1208_v45  ;;  %v310_v23 = vpop.f32.mrb[21].mxu0  ;;  %748 = vmatprep.mubr.bf16.mxu1 %v562_v14  ;;  %v998_v42 = vpop.eup %997  ;;  %v444_v31 = vadd.f32 %v418_v10, %v1282_v19  ;;  %v396_v34 = vmul.f32 %v370_v17, %v1312_v63  ;;  %v395_v39 = vmul.f32 %v369_v16, %v1315_v2 }
 0x155   :  { %v1334_v26 = vadd.f32 %v310_v23, %v1210_v46  ;;  %v312_v3 = vpop.f32.mrb[22].mxu0  ;;  %749 = vmatmul.mubr.bf16.gmra.mrb[4].mxu1 %v561_v59  ;;  %v1000_v32 = vpop.eup %999  ;;  %v516_v37 = vadd.f32 1.0, %v998_v42  ;;  %v468_v41 = vmul.f32 0.7978846, %v442_v30  ;;  %v420_v44 = vmul.f32 %v394_v25, %v1302_v52 }
 0x156   :  { %v1338_v28 = vadd.f32 %v312_v3, %v1208_v45  ;;  %v314_v29 = vpop.f32.mrb[23].mxu0  ;;  %v371_v11 = vmul.f32 0.044715, %v1329_v22  ;;  %v518_v40 = vadd.f32 1.0, %v1000_v32  ;;  %v470_v48 = vmul.f32 0.7978846, %v444_v31 }
 0x157   :  { %v372_v35 = vmul.f32 0.044715, %v1334_v26  ;;  %v1345_v36 = vadd.f32 %v314_v29, %v1210_v46  ;;  %v542_v55 = vmul.f32 %v516_v37, %v1298_v43  ;;  %1005 = vtanh.f32 %v468_v41 }
 0x158   :  { %v373_v51 = vmul.f32 0.044715, %v1338_v28  ;;  %v544_v57 = vmul.f32 %v518_v40, %v336_v0  ;;  %v422_v33 = vmul.f32 %v396_v34, %v1312_v63  ;;  %v335_v62 = vmul.f32 0.5, %v1255_v49 }
 0x159   :  { %v374_v50 = vmul.f32 0.044715, %v1345_v36  ;;  %v398_v54 = vmul.f32 %v372_v35, %v1334_v26  ;;  %1007 = vtanh.f32 %v470_v48  ;;  %v419_v1 = vmul.f32 %v393_v27, %v1307_v58 }
 0x15a   :  { %v421_v4 = vmul.f32 %v395_v39, %v1315_v2  ;;  %v564_v56 = vpack.c.bf16 %v544_v57, %v542_v55  ;;  %v441_v53 = vadd.f32 %v415_v47, %v1274_v12  ;;  %v397_v43 = vmul.f32 %v371_v11, %v1329_v22 }
 0x15b   :  { %v400_v60 = vmul.f32 %v374_v50, %v1345_v36  ;;  %v318_v61 = vpop.f32.mrb[24].mxu0  ;;  %v399_v6 = vmul.f32 %v373_v51, %v1338_v28  ;;  %v443_v10 = vadd.f32 %v417_v24, %v1279_v18  ;;  %v424_v13 = vmul.f32 %v398_v54, %v1334_v26 }
 0x15c   :  { %v320_v5 = vpop.f32.mrb[25].mxu0  ;;  %v1002_v49 = vpop.eup %1001  ;;  %v1368_v14 = vadd.f32 %v318_v61, %v1208_v45  ;;  %756 = vmatprep.mubr.bf16.mxu1 %v564_v56  ;;  %v467_v17 = vmul.f32 0.7978846, %v441_v53  ;;  %v446_v20 = vadd.f32 %v420_v44, %v1302_v52  ;;  %v448_v47 = vadd.f32 %v422_v33, %v1312_v63 }
 0x15d   :  { %v1363_v7 = vadd.f32 %v320_v5, %v1210_v46  ;;  %v322_v9 = vpop.f32.mrb[26].mxu0  ;;  %v1004_v59 = vpop.eup %1003  ;;  %v426_v0 = vmul.f32 %v400_v60, %v1345_v36  ;;  %v515_v21 = vadd.f32 1.0, %v1002_v49  ;;  %v469_v46 = vmul.f32 0.7978846, %v443_v10 }
 0x15e   :  { %v323_v15 = vpop.f32.mrb[27].mxu0  ;;  %v517_v23 = vadd.f32 1.0, %v1004_v59  ;;  %1009 = vtanh.f32 %v467_v17  ;;  %v472_v24 = vmul.f32 0.7978846, %v446_v20  ;;  %v423_v45 = vmul.f32 %v397_v43, %v1329_v22 }
 0x15f   :  { %v376_v16 = vmul.f32 0.044715, %v1363_v7  ;;  %v338_v25 = vmul.f32 0.5, %v1271_v8  ;;  %1011 = vtanh.f32 %v469_v46  ;;  %v474_v3 = vmul.f32 0.7978846, %v448_v47 }
 0x160   :  { %v375_v42 = vmul.f32 0.044715, %v1368_v14  ;;  %v541_v27 = vmul.f32 %v515_v21, %v1294_v38  ;;  %v543_v29 = vmul.f32 %v517_v23, %v335_v62  ;;  %1013 = vtanh.f32 %v472_v24 }
 0x161   :  { %v425_v30 = vmul.f32 %v399_v6, %v1338_v28  ;;  %1015 = vtanh.f32 %v474_v3  ;;  %v445_v31 = vadd.f32 %v419_v1, %v1307_v58  ;;  %v447_v32 = vadd.f32 %v421_v4, %v1315_v2  ;;  %v1006_v34 = vpop.eup %1005 }
 0x162   :  { %v402_v35 = vmul.f32 %v376_v16, %v1363_v7  ;;  %v563_v37 = vpack.c.bf16 %v543_v29, %v541_v27  ;;  %v450_v8 = vadd.f32 %v424_v13, %v1334_v26  ;;  %v452_v39 = vadd.f32 %v426_v0, %v1345_v36 }
 0x163   :  { %v1008_v11 = vpop.eup %1007  ;;  %v340_v38 = vmul.f32 0.5, %v1282_v19  ;;  %v520_v40 = vadd.f32 1.0, %v1006_v34  ;;  %v471_v41 = vmul.f32 0.7978846, %v445_v31  ;;  %v473_v44 = vmul.f32 0.7978846, %v447_v32 }
 0x164   :  { %v401_v51 = vmul.f32 %v375_v42, %v1368_v14  ;;  %757 = vmatmul.mubr.bf16.gmra.mrb[8].mxu1 %v563_v37  ;;  %v522_v50 = vadd.f32 1.0, %v1008_v11  ;;  %v476_v48 = vmul.f32 0.7978846, %v450_v8  ;;  %v478_v54 = vmul.f32 0.7978846, %v452_v39 }
 0x165   :  { %1017 = vtanh.f32 %v471_v41  ;;  %v449_v55 = vadd.f32 %v423_v45, %v1329_v22  ;;  %v451_v57 = vadd.f32 %v425_v30, %v1338_v28  ;;  %v546_v33 = vmul.f32 %v520_v40, %v338_v25 }
 0x166   :  { %v548_v60 = vmul.f32 %v522_v50, %v340_v38  ;;  %1019 = vtanh.f32 %v473_v44  ;;  %v428_v61 = vmul.f32 %v402_v35, %v1363_v7  ;;  %v427_v56 = vmul.f32 %v401_v51, %v1368_v14 }
 0x167   :  { %1021 = vtanh.f32 %v476_v48  ;;  %v475_v19 = vmul.f32 0.7978846, %v449_v55  ;;  %v477_v62 = vmul.f32 0.7978846, %v451_v57  ;;  %v337_v43 = vmul.f32 0.5, %v1274_v12 }
 0x168   :  { %v1010_v1 = vpop.eup %1009  ;;  %v566_v4 = vpack.c.bf16 %v548_v60, %v546_v33  ;;  %1023 = vtanh.f32 %v478_v54  ;;  %v454_v5 = vadd.f32 %v428_v61, %v1363_v7  ;;  %v339_v6 = vmul.f32 0.5, %v1279_v18 }
 0x169   :  { %v1012_v53 = vpop.eup %1011  ;;  %v519_v9 = vadd.f32 1.0, %v1010_v1  ;;  %1025 = vtanh.f32 %v475_v19  ;;  %v453_v15 = vadd.f32 %v427_v56, %v1368_v14  ;;  %v342_v20 = vmul.f32 0.5, %v1302_v52 }
 0x16a   :  { %v1014_v10 = vpop.eup %1013  ;;  %764 = vmatprep.mubr.bf16.mxu1 %v566_v4  ;;  %v521_v49 = vadd.f32 1.0, %v1012_v53  ;;  %1027 = vtanh.f32 %v477_v62  ;;  %v480_v13 = vmul.f32 0.7978846, %v454_v5  ;;  %v344_v59 = vmul.f32 0.5, %v1312_v63 }
 0x16b   :  { %v1016_v17 = vpop.eup %1015  ;;  %v524_v0 = vadd.f32 1.0, %v1014_v10  ;;  %v545_v21 = vmul.f32 %v519_v9, %v337_v43  ;;  %v479_v18 = vmul.f32 0.7978846, %v453_v15  ;;  %v341_v27 = vmul.f32 0.5, %v1307_v58 }
 0x16c   :  { %v547_v46 = vmul.f32 %v521_v49, %v339_v6  ;;  %v526_v12 = vadd.f32 1.0, %v1016_v17  ;;  %1029 = vtanh.f32 %v480_v13  ;;  %v343_v52 = vmul.f32 0.5, %v1315_v2 }
 0x16d   :  { %v550_v16 = vmul.f32 %v524_v0, %v342_v20  ;;  %1031 = vtanh.f32 %v479_v18  ;;  %v346_v30 = vmul.f32 0.5, %v1334_v26  ;;  %v348_v37 = vmul.f32 0.5, %v1345_v36 }
 0x16e   :  { %v565_v47 = vpack.c.bf16 %v547_v46, %v545_v21  ;;  %v552_v23 = vmul.f32 %v526_v12, %v344_v59  ;;  %v345_v11 = vmul.f32 0.5, %v1329_v22  ;;  %v347_v58 = vmul.f32 0.5, %v1338_v28 }
 0x16f   :  { %v1018_v24 = vpop.eup %1017  ;;  %v350_v26 = vmul.f32 0.5, %v1363_v7  ;;  %v349_v28 = vmul.f32 0.5, %v1368_v14  ;;  %v1407_v7 = vld [vmem:[%s1441_s4] ss:$0 sm:$0xff]  ;;  %s1135_s4 = smov [#allocation8]  }
 0x170   :  { %v1020_v45 = vpop.eup %1019  ;;  %765 = vmatmul.mubr.bf16.gmra.mrb[12].mxu1 %v565_v47  ;;  %v568_v25 = vpack.c.bf16 %v552_v23, %v550_v16  ;;  %v523_v3 = vadd.f32 1.0, %v1018_v24  ;;  %s814_s10 = sshll.u32 %s1135_s4, 4  ;;  %s815_s10 = int_to_ptr.vmem [resolvable:$true] %s814_s10 }
 0x171   :  { %v1022_v42 = vpop.eup %1021  ;;  %v525_v63 = vadd.f32 1.0, %v1020_v45  ;;  %s1099_s11 = scalar_lea.vmem %s815_s10, 1664  ;;  %p1104_p11 = scmp.lt.s32.totalorder %s815_s10, %s815_s10 }
 0x172   :  { %v1024_v29 = vpop.eup %1023  ;;  %772 = vmatprep.mubr.bf16.mxu1 %v568_v25  ;;  %v528_v31 = vadd.f32 1.0, %v1022_v42  ;;  %v549_v34 = vmul.f32 %v523_v3, %v341_v27  ;;  %p1100_p10 = scmp.ne.s32.totalorder %s815_s10, %s1099_s11  ;;  %p1105_p12 = scmp.lt.s32.totalorder %s1099_s11, %s1099_s11 }
 0x173   :  { %v1026_v32 = vpop.eup %1025  ;;  %v551_v35 = vmul.f32 %v525_v63, %v343_v52  ;;  %v530_v8 = vadd.f32 1.0, %v1024_v29 }
 0x174   :  { %v1028_v39 = vpop.eup %1027  ;;  %v527_v38 = vadd.f32 1.0, %v1026_v32  ;;  %v554_v40 = vmul.f32 %v528_v31, %v346_v30  ;;  %p1106_p13 = por %p1105_p12, %p1104_p11 }
 0x175   :  { %v567_v2 = vpack.c.bf16 %v551_v35, %v549_v34  ;;  %v556_v41 = vmul.f32 %v530_v8, %v348_v37  ;;  %v529_v44 = vadd.f32 1.0, %v1028_v39 }
 0x176   :  { %v1030_v51 = vpop.eup %1029  ;;  %v553_v48 = vmul.f32 %v527_v38, %v345_v11  ;;  %p1107_p0 = pnand %p1106_p13, %p1100_p10 }
 0x177   :  { %v570_v50 = vpack.c.bf16 %v556_v41, %v554_v40  ;;  %v555_v54 = vmul.f32 %v529_v44, %v347_v58  ;;  %v532_v55 = vadd.f32 1.0, %v1030_v51  ;;  %v1032_v33 = vpop.eup %1031 }
 0x178   :  { %773 = vmatmul.mubr.bf16.gmra.mrb[16].mxu1 %v567_v2  ;;  %v531_v60 = vadd.f32 1.0, %v1032_v33 }
 0x179   :  { %780 = vmatprep.mubr.bf16.mxu1 %v570_v50  ;;  %v569_v36 = vpack.c.bf16 %v555_v54, %v553_v48  ;;  %v558_v57 = vmul.f32 %v532_v55, %v350_v26 }
 0x17a   :  { %v557_v61 = vmul.f32 %v531_v60, %v349_v28 }
 0x17b   :  { %v572_v22 = vpack.c.bf16 %v558_v57, %v558_v57 }
 0x17c   :  { %v571_v19 = vpack.c.bf16 %v557_v61, %v557_v61 }
 0x180   :  { %781 = vmatmul.mubr.bf16.gmra.mrb[20].mxu1 %v569_v36 }
 0x181   :  { %788 = vmatprep.mubr.bf16.mxu1 %v572_v22 }
 0x188   :  { %789 = vmatmul.mubr.bf16.gmra.mrb[24].mxu1 %v571_v19 }
 0x220   :  { %v883_v62 = vpop.f32.mrb[0].mxu1 }
 0x221   :  { %v884_v1 = vpop.f32.mrb[1].mxu1 }
 0x222   :  { %v885_v4 = vadd.f32 %v884_v1, %v883_v62  ;;  %v886_v5 = vpop.f32.mrb[2].mxu1 }
 0x223   :  { %v887_v56 = vpop.f32.mrb[3].mxu1 }
 0x224   :  { %v743_v53 = vadd.f32 %v885_v4, %v1407_v7  ;;  %v888_v43 = vadd.f32 %v887_v56, %v886_v5 }
 0x226   :  { %796 = vst [vmem:[#allocation8] sm:$0xff] %v743_v53  ;;  %v746_v14 = vadd.f32 %v888_v43, %v1407_v7 }
 0x228   :  { %797 = vst [vmem:[#allocation8 + $0x8] sm:$0xff] %v746_v14  ;;  %v889_v6 = vpop.f32.mrb[4].mxu1 }
 0x229   :  { %v890_v9 = vpop.f32.mrb[5].mxu1 }
 0x22a   :  { %v891_v10 = vadd.f32 %v890_v9, %v889_v6  ;;  %v892_v49 = vpop.f32.mrb[6].mxu1 }
 0x22b   :  { %v893_v13 = vpop.f32.mrb[7].mxu1 }
 0x22c   :  { %v751_v15 = vadd.f32 %v891_v10, %v1407_v7  ;;  %v894_v17 = vadd.f32 %v893_v13, %v892_v49 }
 0x22e   :  { %798 = vst [vmem:[#allocation8 + $0x10] sm:$0xff] %v751_v15  ;;  %v754_v20 = vadd.f32 %v894_v17, %v1407_v7 }
 0x230   :  { %799 = vst [vmem:[#allocation8 + $0x18] sm:$0xff] %v754_v20 }
 0x237   :  { %v895_v59 = vpop.f32.mrb[8].mxu1 }
 0x238   :  { %v896_v0 = vpop.f32.mrb[9].mxu1 }
 0x239   :  { %v897_v21 = vadd.f32 %v896_v0, %v895_v59  ;;  %v898_v46 = vpop.f32.mrb[10].mxu1 }
 0x23a   :  { %v899_v12 = vpop.f32.mrb[11].mxu1 }
 0x23b   :  { %v759_v18 = vadd.f32 %v897_v21, %v1407_v7  ;;  %v900_v47 = vadd.f32 %v899_v12, %v898_v46 }
 0x23d   :  { %800 = vst [vmem:[#allocation8 + $0x20] sm:$0xff] %v759_v18  ;;  %v762_v16 = vadd.f32 %v900_v47, %v1407_v7 }
 0x23f   :  { %801 = vst [vmem:[#allocation8 + $0x28] sm:$0xff] %v762_v16 }
 0x243   :  { %v901_v23 = vpop.f32.mrb[12].mxu1 }
 0x244   :  { %v902_v24 = vpop.f32.mrb[13].mxu1 }
 0x245   :  { %v903_v45 = vadd.f32 %v902_v24, %v901_v23  ;;  %v904_v25 = vpop.f32.mrb[14].mxu1 }
 0x246   :  { %v905_v3 = vpop.f32.mrb[15].mxu1 }
 0x247   :  { %v767_v42 = vadd.f32 %v903_v45, %v1407_v7  ;;  %v906_v27 = vadd.f32 %v905_v3, %v904_v25 }
 0x249   :  { %802 = vst [vmem:[#allocation8 + $0x30] sm:$0xff] %v767_v42  ;;  %v770_v52 = vadd.f32 %v906_v27, %v1407_v7 }
 0x24b   :  { %803 = vst [vmem:[#allocation8 + $0x38] sm:$0xff] %v770_v52  ;;  %v907_v63 = vpop.f32.mrb[16].mxu1 }
 0x24c   :  { %v908_v29 = vpop.f32.mrb[17].mxu1 }
 0x24d   :  { %v909_v30 = vadd.f32 %v908_v29, %v907_v63  ;;  %v910_v31 = vpop.f32.mrb[18].mxu1 }
 0x24e   :  { %v911_v32 = vpop.f32.mrb[19].mxu1 }
 0x24f   :  { %v775_v34 = vadd.f32 %v909_v30, %v1407_v7  ;;  %v912_v35 = vadd.f32 %v911_v32, %v910_v31 }
 0x251   :  { %804 = vst [vmem:[#allocation8 + $0x40] sm:$0xff] %v775_v34  ;;  %v778_v37 = vadd.f32 %v912_v35, %v1407_v7 }
 0x253   :  { %805 = vst [vmem:[#allocation8 + $0x48] sm:$0xff] %v778_v37  ;;  %v913_v8 = vpop.f32.mrb[20].mxu1 }
 0x254   :  { %v914_v39 = vpop.f32.mrb[21].mxu1 }
 0x255   :  { %v915_v11 = vadd.f32 %v914_v39, %v913_v8  ;;  %v916_v58 = vpop.f32.mrb[22].mxu1 }
 0x256   :  { %v917_v38 = vpop.f32.mrb[23].mxu1 }
 0x257   :  { %v783_v2 = vadd.f32 %v915_v11, %v1407_v7  ;;  %v918_v40 = vadd.f32 %v917_v38, %v916_v58 }
 0x259   :  { %806 = vst [vmem:[#allocation8 + $0x50] sm:$0xff] %v783_v2  ;;  %v786_v41 = vadd.f32 %v918_v40, %v1407_v7 }
 0x25b   :  { %807 = vst [vmem:[#allocation8 + $0x58] sm:$0xff] %v786_v41  ;;  %v919_v44 = vpop.f32.mrb[24].mxu1 }
 0x25c   :  { %v920_v51 = vpop.f32.mrb[25].mxu1 }
 0x25d   :  { %v921_v26 = vadd.f32 %v920_v51, %v919_v44  ;;  %v922_v50 = vpop.f32.mrb[26].mxu1 }
 0x25e   :  { %v923_v48 = vpop.f32.mrb[27].mxu1 }
 0x25f   :  { %v791_v54 = vadd.f32 %v921_v26, %v1407_v7 }
 0x261   :  { %808 = vst [vmem:[#allocation8 + $0x60] sm:$0xf] %v791_v54 }
 0x262   :  { %1110 = shalt.err (!%p1107_p0)
}
 0x263   :  { %s1111_s14 = scalar_lea.hbm %s1442_s5, 1664 }
 0x264   :  { %p1112_p1 = scmp.ne.s32.totalorder %s1442_s5, %s1111_s14  ;;  %p1115_p2 = scmp.lt.u32.totalorder %s1111_s14, %s1442_s5 }
 0x266   :  { %p1117_p3 = pnand %p1115_p2, %p1112_p1 }
 0x268   :  { %1120 = shalt.err (!%p1117_p3)
}
 0x269   :  { %820 = dma.vmem_to_hbm [thread:$0]  %s815_s10, 1664, %s1442_s5, [#allocation4], %s1128_s28, %s1128_s28, %s1129_s29  }
 0x26a   :  { %1125 = dma.done.wait [#allocation4], 1664  }
 0x26b   :  { %1126 = vsyncadd [#allocation4], 4294965632 }
 0x26c   :  { %824 = vsyncpa [#allocation3], 1 }
 0x26d   :  { %825 = vsyncpa [#allocation6], 1 }
 0x26e   :  { %826 = vsyncpa [#allocation4], 1 }

</bundles_post_ra>
